<compile_context>
chip_gen: v7x
topology: tpu7x:2x2x1
jax: 0.10.0
libtpu: 0.0.40
codegen_flags: <defaults>
</compile_context>

<pallas_src>
import functools

import numpy as np

import jax
import jax.numpy as jnp
from jax.experimental import pallas as pl
from jax.experimental.pallas import tpu as pltpu

MiB = 1024 * 1024
_FLAT_OPERATOR_MAX_BYTES = 4 * MiB      # use the whole-image operator up to ~32x32


# --------------------------------------------------------------------------- #
# Hardware / policy helpers                                                    #
# --------------------------------------------------------------------------- #
def _vmem_capacity_bytes():
    try:
        cap = int(getattr(pltpu.get_tpu_info(), "vmem_capacity_bytes"))
        if cap > 0:
            return cap
    except Exception:
        pass
    return 64 * MiB  # conservative (v7x per-TensorCore)


def _num_tensorcores():
    """2 for megacore / dual-TC parts (v4, v5p, v7x); 1 for v5e/v6e."""
    try:
        kind = jax.devices()[0].device_kind.lower()
    except Exception:
        return 1
    if any(t in kind for t in ("lite", "v5e", "v6e", "v6 lite", "v5 lite")):
        return 1
    return 2


def _largest_divisor_le(n, cap, cores=1):
    """Largest divisor of n that is <= cap (and leaves >= `cores` grid steps)."""
    cap = max(1, min(n, int(cap)))
    if cores > 1 and n >= 2 * cores:
        cap = min(cap, max(1, n // cores))   # megacore: keep >= `cores` steps
    for d in range(cap, 0, -1):
        if n % d == 0:
            return d
    return 1


@functools.cache
def _mxu_precision():
    """Cheapest matmul precision that Mosaic supports AND that keeps ~f32
    accuracy.  Tries Precision.HIGH (3-pass bf16); falls back to HIGHEST if the
    lowering rejects it or if it degrades to a single bf16 pass."""
    try:
        a = jnp.linspace(0.33, 1.0, 8 * 128, dtype=jnp.float32).reshape(8, 128)
        b = jnp.eye(128, dtype=jnp.float32) * (1.0 / 25.0)

        def probe(a_ref, b_ref, o_ref):
            o_ref[...] = jnp.dot(a_ref[...], b_ref[...],
                                 precision=jax.lax.Precision.HIGH,
                                 preferred_element_type=jnp.float32)

        out = pl.pallas_call(
            probe, out_shape=jax.ShapeDtypeStruct((8, 128), jnp.float32))(a, b)
        if bool(jnp.allclose(out, a * (1.0 / 25.0), atol=1e-9, rtol=3e-5)):
            return jax.lax.Precision.HIGH
    except Exception:
        pass
    return jax.lax.Precision.HIGHEST


# --------------------------------------------------------------------------- #
# Reflect + box filter as small dense band matrices                            #
# --------------------------------------------------------------------------- #
def _reflect_box_matrix(n, radius):
    """(n, n) matrix B with B[out, in] = 1-D box weight, reflection folded in."""
    k = 2 * radius + 1
    B = np.zeros((n, n), np.float32)
    for i in range(n):
        for t in range(-radius, radius + 1):
            j = i + t
            if j < 0:
                j = -j
            elif j >= n:
                j = 2 * (n - 1) - j
            B[i, j] += 1.0 / k
    return B


# --------------------------------------------------------------------------- #
# Kernels                                                                      #
# --------------------------------------------------------------------------- #
def _lcn_kernel_flat(x_ref, at_ref, img_ref, std_ref, avg_ref, *, epsilon, precision):
    """Small-image path: whole-image operator, lane-dense (nb, HW) blocks."""
    x = x_ref[...]                      # (nb, HW)
    at = at_ref[...]                    # (HW, HW) = A^T, A = kron(Bv, Bh)

    avg = jnp.dot(x, at, precision=precision, preferred_element_type=jnp.float32)
    diff = x - avg
    var = jnp.dot(diff * diff, at, precision=precision,
                  preferred_element_type=jnp.float32)
    std = jnp.sqrt(jnp.maximum(var, 0.0))             # clamp: bf16 passes can go <0
    inv = pl.reciprocal(std + epsilon, approx=False)  # EUP; exact for 1e-4 parity
    img_ref[...] = (diff * inv).astype(img_ref.dtype)
    std_ref[...] = std.astype(std_ref.dtype)
    avg_ref[...] = avg.astype(avg_ref.dtype)


def _lcn_kernel_sep(x_ref, bv_ref, bht_ref, img_ref, std_ref, avg_ref, *,
                    epsilon, precision):
    """General path: separable band matmuls, batched over nb images (no kron)."""
    x = x_ref[...]                      # (nb, H, W)
    nb = x.shape[0]
    bv = jnp.broadcast_to(bv_ref[...], (nb,) + bv_ref.shape)    # (nb, H, H)
    bht = jnp.broadcast_to(bht_ref[...], (nb,) + bht_ref.shape)  # (nb, W, W) = Bh^T

    def box(v):
        h = jnp.einsum("nhk,nkw->nhw", v, bht, precision=precision,
                       preferred_element_type=jnp.float32)       # horizontal pass
        return jnp.einsum("nhk,nkw->nhw", bv, h, precision=precision,
                          preferred_element_type=jnp.float32)    # vertical pass

    avg = box(x)
    diff = x - avg
    var = box(diff * diff)
    std = jnp.sqrt(jnp.maximum(var, 0.0))
    inv = pl.reciprocal(std + epsilon, approx=False)
    img_ref[...] = (diff * inv).astype(img_ref.dtype)
    std_ref[...] = std.astype(std_ref.dtype)
    avg_ref[...] = avg.astype(avg_ref.dtype)


# --------------------------------------------------------------------------- #
# Wrapper                                                                      #
# --------------------------------------------------------------------------- #
def lcn_forward(data, radius, epsilon, precision=None):
    """data: (N, 1, H, W) float32 (NCHW).  Returns (img, std, avg), same shape."""
    N, C, H, W = data.shape
    assert C == 1, "LCN uses Conv2d(1, 1, ...); input must have a single channel."
    assert radius < H and radius < W, "ReflectionPad2d requires radius < H and < W."
    if precision is None:
        precision = _mxu_precision()

    x = jnp.asarray(data, jnp.float32)

    # Generation-aware VMEM policy.
    vmem_cap = _vmem_capacity_bytes()
    vmem_limit = max(32 * MiB, min(vmem_cap - 8 * MiB, 112 * MiB))
    budget = vmem_limit // 2            # target working set of one grid step
    cores = _num_tensorcores()

    bv = _reflect_box_matrix(H, radius)
    bh = _reflect_box_matrix(W, radius)
    HW = H * W
    shape4 = (N, 1, H, W)
    epsilon = float(epsilon)

    if HW * HW * 4 <= _FLAT_OPERATOR_MAX_BYTES:
        # ---- FLAT path: whole-image operator, lane-dense stores ---- #
        at = jnp.asarray(np.ascontiguousarray(np.kron(bv, bh).T))   # (HW, HW)
        const_bytes = 2 * at.size * 4                    # resident, double-buffered
        per_image = 16 * 4 * HW                          # in + 3 out (x2) + temps
        nb = _largest_divisor_le(N, max(1, (budget - const_bytes) // per_image),
                                 cores)
        G = N // nb
        x3 = x.reshape(G, nb, HW)                        # free reshape
        out_sd = jax.ShapeDtypeStruct((G, nb, HW), jnp.float32)
        blk = pl.BlockSpec((None, nb, HW), lambda g: (g, 0, 0))

        img, std, avg = pl.pallas_call(
            functools.partial(_lcn_kernel_flat, epsilon=epsilon, precision=precision),
            out_shape=(out_sd,) * 3,
            grid=(G,),
            in_specs=[blk, pl.BlockSpec((HW, HW), lambda g: (0, 0))],
            out_specs=(blk,) * 3,
            compiler_params=pltpu.CompilerParams(
                dimension_semantics=("parallel",),
                vmem_limit_bytes=int(vmem_limit)),
            cost_estimate=pl.CostEstimate(
                flops=int(4 * N * HW * HW + 8 * N * HW),
                transcendentals=int(2 * N * HW),
                bytes_accessed=int(4 * (4 * N * HW + HW * HW))),
        )(x3, at)
    else:
        # ---- SEPARABLE path: per-image batched band matmuls ---- #
        per_image = 16 * 4 * HW + 8 * (H * H + W * W)
        nb = _largest_divisor_le(N, max(1, budget // per_image), cores)
        G = N // nb
        x3 = x.reshape(N, H, W)
        bvj = jnp.asarray(bv)
        bhtj = jnp.asarray(np.ascontiguousarray(bh.T))
        out_sd = jax.ShapeDtypeStruct((N, H, W), jnp.float32)
        blk = pl.BlockSpec((nb, H, W), lambda g: (g, 0, 0))

        img, std, avg = pl.pallas_call(
            functools.partial(_lcn_kernel_sep, epsilon=epsilon, precision=precision),
            out_shape=(out_sd,) * 3,
            grid=(G,),
            in_specs=[blk,
                      pl.BlockSpec((H, H), lambda g: (0, 0)),
                      pl.BlockSpec((W, W), lambda g: (0, 0))],
            out_specs=(blk,) * 3,
            compiler_params=pltpu.CompilerParams(
                dimension_semantics=("parallel",),
                vmem_limit_bytes=int(vmem_limit)),
            cost_estimate=pl.CostEstimate(
                flops=int(4 * N * H * W * (H + W) + 8 * N * H * W),
                transcendentals=int(2 * N * H * W),
                bytes_accessed=int(4 * (4 * N * H * W + H * H + W * W))),
        )(x3, bvj, bhtj)

    return img.reshape(shape4), std.reshape(shape4), avg.reshape(shape4)


# --------------------------------------------------------------------------- #
# Pure-JAX reference (exact shift-and-add box filter)                          #
# --------------------------------------------------------------------------- #
def _lcn_reference(data, radius, epsilon):
    r = radius
    k = 2 * r + 1
    x = data[:, 0]

    def box(v):
        vp = jnp.pad(v, ((0, 0), (r, r), (r, r)), mode="reflect")
        H, W = v.shape[1], v.shape[2]
        acc = jnp.zeros_like(v)
        for dy in range(k):
            for dx in range(k):
                acc = acc + vp[:, dy:dy + H, dx:dx + W]
        return acc / float(k * k)

    avg = box(x)
    diff = x - avg
    std = jnp.sqrt(box(diff * diff))
    img = diff / (std + epsilon)
    return img[:, None], std[:, None], avg[:, None]


if __name__ == "__main__":
    radius = 2          # 5x5 window, pix_num = 25 (fixed weights 1/25)
    epsilon = 1e-6

    key = jax.random.PRNGKey(0)
    k1, k2 = jax.random.split(key)

    # FLAT path (small images) — the canonical small test.
    data_small = jax.random.uniform(k1, (2, 1, 16, 16), dtype=jnp.float32)
    out_small = lcn_forward(data_small, radius, epsilon)
    jax.block_until_ready(out_small)
    ref_small = _lcn_reference(data_small, radius, epsilon)
    for got, want in zip(out_small, ref_small):
        assert got.shape == want.shape
        assert jnp.allclose(got, want, atol=1e-4, rtol=1e-4), "flat-path mismatch"

    # SEPARABLE path (larger patch) — exercised and validated as well.
    data_med = jax.random.uniform(k2, (3, 1, 40, 48), dtype=jnp.float32)
    out_med = lcn_forward(data_med, radius, epsilon)
    jax.block_until_ready(out_med)
    ref_med = _lcn_reference(data_med, radius, epsilon)
    for got, want in zip(out_med, ref_med):
        assert got.shape == want.shape
        assert jnp.allclose(got, want, atol=1e-4, rtol=1e-4), "separable-path mismatch"

    print("KERNEL_OK")
</pallas_src>

<mosaic_0001>
module attributes {stable_mosaic.version = 11 : i64} {
  func.func @_lcn_kernel_flat(%arg0: i32, %arg1: memref<1x2x256xf32, #tpu.memory_space<vmem>>, %arg2: memref<256x256xf32, #tpu.memory_space<vmem>>, %arg3: memref<1x2x256xf32, #tpu.memory_space<vmem>>, %arg4: memref<1x2x256xf32, #tpu.memory_space<vmem>>, %arg5: memref<1x2x256xf32, #tpu.memory_space<vmem>>) attributes {dimension_semantics = [#tpu.dimension_semantics<parallel>], iteration_bounds = array<i64: 1>, scalar_prefetch = 0 : i64, scratch_operands = 0 : i64, tpu.core_type = #tpu.core_type<tc>, window_params = [{transform_indices = @transform_0, window_bounds = array<i64: 1, 2, 256>}, {pipeline_mode = #tpu.pipeline_mode<synchronous>, transform_indices = @transform_1, window_bounds = array<i64: 256, 256>}, {transform_indices = @transform_2, window_bounds = array<i64: 1, 2, 256>}, {transform_indices = @transform_3, window_bounds = array<i64: 1, 2, 256>}, {transform_indices = @transform_4, window_bounds = array<i64: 1, 2, 256>}]} {
    %c0 = arith.constant 0 : index
    %c0_0 = arith.constant 0 : index
    %c0_1 = arith.constant 0 : index
    %0 = vector.load %arg1[%c0, %c0_0, %c0_1] : memref<1x2x256xf32, #tpu.memory_space<vmem>>, vector<1x2x256xf32>
    %1 = vector.shape_cast %0 : vector<1x2x256xf32> to vector<2x256xf32>
    %c0_2 = arith.constant 0 : index
    %c0_3 = arith.constant 0 : index
    %2 = vector.load %arg2[%c0_2, %c0_3] : memref<256x256xf32, #tpu.memory_space<vmem>>, vector<256x256xf32>
    %cst = arith.constant dense<0.000000e+00> : vector<2x256xf32>
    %3 = tpu.matmul %1, %2, %cst {dimension_numbers = #tpu.dot_dimension_numbers<[1], [0], [0], [1], [0, 0, 1, 1], [], []>, precision = #tpu.contract_precision<fp32>} : vector<2x256xf32>, vector<256x256xf32>, vector<2x256xf32> -> vector<2x256xf32>
    %4 = arith.subf %1, %3 : vector<2x256xf32>
    %5 = arith.mulf %4, %4 : vector<2x256xf32>
    %cst_4 = arith.constant dense<0.000000e+00> : vector<2x256xf32>
    %6 = tpu.matmul %5, %2, %cst_4 {dimension_numbers = #tpu.dot_dimension_numbers<[1], [0], [0], [1], [0, 0, 1, 1], [], []>, precision = #tpu.contract_precision<fp32>} : vector<2x256xf32>, vector<256x256xf32>, vector<2x256xf32> -> vector<2x256xf32>
    %cst_5 = arith.constant 0.000000e+00 : f32
    %7 = vector.broadcast %cst_5 : f32 to vector<2x256xf32>
    %8 = arith.maximumf %6, %7 : vector<2x256xf32>
    %9 = math.sqrt %8 : vector<2x256xf32>
    %cst_6 = arith.constant 9.99999997E-7 : f32
    %10 = vector.broadcast %cst_6 : f32 to vector<2x256xf32>
    %11 = arith.addf %9, %10 : vector<2x256xf32>
    %12 = tpu.reciprocal %11 : vector<2x256xf32> -> vector<2x256xf32>
    %13 = arith.mulf %4, %12 : vector<2x256xf32>
    %c0_7 = arith.constant 0 : index
    %c0_8 = arith.constant 0 : index
    %c0_9 = arith.constant 0 : index
    %14 = vector.load %arg3[%c0_7, %c0_8, %c0_9] : memref<1x2x256xf32, #tpu.memory_space<vmem>>, vector<1x2x256xf32>
    %15 = vector.shape_cast %14 : vector<1x2x256xf32> to vector<2x256xf32>
    %16 = vector.shape_cast %13 : vector<2x256xf32> to vector<1x2x256xf32>
    tpu.vector_store %arg3[%c0_7, %c0_8, %c0_9], %16 {strides = array<i32>} : memref<1x2x256xf32, #tpu.memory_space<vmem>>, vector<1x2x256xf32>,
    %c0_10 = arith.constant 0 : index
    %c0_11 = arith.constant 0 : index
    %c0_12 = arith.constant 0 : index
    %17 = vector.load %arg4[%c0_10, %c0_11, %c0_12] : memref<1x2x256xf32, #tpu.memory_space<vmem>>, vector<1x2x256xf32>
    %18 = vector.shape_cast %17 : vector<1x2x256xf32> to vector<2x256xf32>
    %19 = vector.shape_cast %9 : vector<2x256xf32> to vector<1x2x256xf32>
    tpu.vector_store %arg4[%c0_10, %c0_11, %c0_12], %19 {strides = array<i32>} : memref<1x2x256xf32, #tpu.memory_space<vmem>>, vector<1x2x256xf32>,
    %c0_13 = arith.constant 0 : index
    %c0_14 = arith.constant 0 : index
    %c0_15 = arith.constant 0 : index
    %20 = vector.load %arg5[%c0_13, %c0_14, %c0_15] : memref<1x2x256xf32, #tpu.memory_space<vmem>>, vector<1x2x256xf32>
    %21 = vector.shape_cast %20 : vector<1x2x256xf32> to vector<2x256xf32>
    %22 = vector.shape_cast %3 : vector<2x256xf32> to vector<1x2x256xf32>
    tpu.vector_store %arg5[%c0_13, %c0_14, %c0_15], %22 {strides = array<i32>} : memref<1x2x256xf32, #tpu.memory_space<vmem>>, vector<1x2x256xf32>,
    return
  }
  func.func @transform_0(%arg0: i32) -> (i32, i32, i32) {
    %c0_i32 = arith.constant 0 : i32
    %c0_i32_0 = arith.constant 0 : i32
    %c0_i32_1 = arith.constant 0 : i32
    return %arg0, %c0_i32, %c0_i32_0 : i32, i32, i32
  }
  func.func @transform_1(%arg0: i32) -> (i32, i32) {
    %c0_i32 = arith.constant 0 : i32
    %c0_i32_0 = arith.constant 0 : i32
    %c0_i32_1 = arith.constant 0 : i32
    return %c0_i32, %c0_i32_0 : i32, i32
  }
  func.func @transform_2(%arg0: i32) -> (i32, i32, i32) {
    %c0_i32 = arith.constant 0 : i32
    %c0_i32_0 = arith.constant 0 : i32
    %c0_i32_1 = arith.constant 0 : i32
    return %arg0, %c0_i32, %c0_i32_0 : i32, i32, i32
  }
  func.func @transform_3(%arg0: i32) -> (i32, i32, i32) {
    %c0_i32 = arith.constant 0 : i32
    %c0_i32_0 = arith.constant 0 : i32
    %c0_i32_1 = arith.constant 0 : i32
    return %arg0, %c0_i32, %c0_i32_0 : i32, i32, i32
  }
  func.func @transform_4(%arg0: i32) -> (i32, i32, i32) {
    %c0_i32 = arith.constant 0 : i32
    %c0_i32_0 = arith.constant 0 : i32
    %c0_i32_1 = arith.constant 0 : i32
    return %arg0, %c0_i32, %c0_i32_0 : i32, i32, i32
  }
}

</mosaic_0001>

<bundles_post_ra>
// kernel: tpu_custom_call.1
= control target key start
LH: loop header
LB: loop body
LE: loop exit
PB: predicated region body
PF: predicated region fallthrough
CT: control target
= control target key end

     0   :  { %10 = vsyncpa [#allocation3], 0  ;;  %s5658_s0 = inlined_call_operand.hbm [shape: f32[1,2,256], index: 0, kind: input, shape index: {}]   ;;  %s5659_s1 = inlined_call_operand.hbm [shape: f32[256,256], index: 1, kind: input, shape index: {}]   ;;  %s5660_s2 = inlined_call_operand.hbm [shape: f32[1,2,256], index: 2, kind: output, shape index: {0}]   ;;  %s5661_s3 = inlined_call_operand.hbm [shape: f32[1,2,256], index: 3, kind: output, shape index: {1}]   ;;  %s5662_s4 = inlined_call_operand.hbm [shape: f32[1,2,256], index: 4, kind: output, shape index: {2}]  }
   0x1   :  { %11 = vsyncpa [#allocation6], 0 }
   0x2   :  { %12 = vsyncpa [#allocation4], 0 }
   0x3   :  { %13 = vsyncpa [#allocation9], 0  ;;  %s3725_s15 = smov [#allocation2]   ;;  %s3726_s17 = smov [#allocation5]  }
   0x4   :  { %s20_s16 = sshll.u32 %s3725_s15, 4  ;;  %s29_s18 = sshll.u32 %s3726_s17, 4  ;;  %s21_s16 = int_to_ptr.vmem [resolvable:$true] %s20_s16  ;;  %s3758_s18 = int_to_ptr.vmem [resolvable:$true] %s29_s18 }
   0x5   :  { %s3607_s21 = scalar_lea.hbm %s5658_s0, 64 }
   0x6   :  { %p3608_p0 = scmp.ne.s32.totalorder %s5658_s0, %s3607_s21  ;;  %p3611_p1 = scmp.lt.u32.totalorder %s3607_s21, %s5658_s0 }
   0x8   :  { %p3613_p2 = pnand %p3611_p1, %p3608_p0 }
   0xa   :  { %3616 = shalt.err (!%p3613_p2)
}
   0xb   :  { %s3617_s26 = scalar_lea.vmem %s21_s16, 64  ;;  %p3622_p4 = scmp.lt.s32.totalorder %s21_s16, %s21_s16 }
   0xc   :  { %p3618_p3 = scmp.ne.s32.totalorder %s21_s16, %s3617_s26  ;;  %p3623_p5 = scmp.lt.s32.totalorder %s3617_s26, %s3617_s26 }
   0xe   :  { %p3624_p6 = por %p3623_p5, %p3622_p4 }
  0x10   :  { %p3625_p7 = pnand %p3624_p6, %p3618_p3 }
  0x12   :  { %3628 = shalt.err (!%p3625_p7)
}
  0x13   :  { %23 = dma.hbm_to_vmem [thread:$0]  %s5658_s0, 64, %s21_s16, [#allocation3]  }
  0x14   :  { %s3629_s5 = scalar_lea.hbm %s5659_s1, 8192 }
  0x15   :  { %p3630_p8 = scmp.ne.s32.totalorder %s5659_s1, %s3629_s5  ;;  %p3633_p9 = scmp.lt.u32.totalorder %s3629_s5, %s5659_s1 }
  0x17   :  { %p3635_p10 = pnand %p3633_p9, %p3630_p8 }
  0x19   :  { %3638 = shalt.err (!%p3635_p10)
}
  0x1a   :  { %s3639_s10 = scalar_lea.vmem %s3758_s18, 8192  ;;  %p3644_p12 = scmp.lt.s32.totalorder %s3758_s18, %s3758_s18 }
  0x1b   :  { %p3640_p11 = scmp.ne.s32.totalorder %s3758_s18, %s3639_s10  ;;  %p3645_p13 = scmp.lt.s32.totalorder %s3639_s10, %s3639_s10 }
  0x1d   :  { %p3646_p0 = por %p3645_p13, %p3644_p12 }
  0x1f   :  { %p3647_p1 = pnand %p3646_p0, %p3640_p11 }
  0x21   :  { %3650 = shalt.err (!%p3647_p1)
}
  0x22   :  { %s3727_s0 = smov 256   ;;  %s3728_s11 = smov 16  }
  0x23   :  { %35 = dma.hbm_to_vmem [thread:$0]  %s5659_s1, 8192, %s3758_s18, [#allocation6], %s3727_s0, %s3727_s0, %s3728_s11  }
  0x24   :  { %3717 = dma.done.wait [#allocation3], 64  }
  0x25   :  { %3718 = vsyncadd [#allocation3], 4294967232 }
  0x26   :  { %3719 = dma.done.wait [#allocation6], 8192  }
  0x27   :  { %3720 = vsyncadd [#allocation6], 4294959104  ;;  %v3789_v0 = vld [vmem:[#allocation5 + $0x8] sm:$0xff]  ;;  %v3791_v1 = vld [vmem:[#allocation5 + $0x18] sm:$0xff]  ;;  %v3729_v47 = vmov 1983009808   ;;  %v111_v49 = vlaneseq }
  0x28   :  { %v3793_v2 = vld [vmem:[#allocation5] sm:$0xff]  ;;  %v5686_v3 = vand.u32 4294901760, %v3789_v0  ;;  %v5683_v4 = vand.u32 4294901760, %v3791_v1  ;;  %v3797_v5 = vld [vmem:[#allocation5 + $0x10] sm:$0xff]  ;;  %v3800_v7 = vld [vmem:[#allocation5 + $0x28] sm:$0xff]  ;;  %v109_v48 = vunpack.c.l.s4 %v3729_v47  ;;  %s3730_s1 = smov [#allocation8]  }
  0x29   :  { %v5682_v6 = vand.u32 4294901760, %v3793_v2  ;;  %v3802_v8 = vld [vmem:[#allocation5 + $0x38] sm:$0xff]  ;;  %v5681_v9 = vand.u32 4294901760, %v3797_v5  ;;  %v5680_v10 = vand.u32 4294901760, %v3800_v7  ;;  %v3807_v12 = vld [vmem:[#allocation5 + $0x20] sm:$0xff]  ;;  %v3809_v13 = vld [vmem:[#allocation5 + $0x30] sm:$0xff] }
  0x2a   :  { %v5679_v11 = vand.u32 4294901760, %v3802_v8  ;;  %v3811_v14 = vld [vmem:[#allocation5 + $0x48] sm:$0xff]  ;;  %v3817_v15 = vpack.c.bf16 %v5683_v4, %v5686_v3  ;;  %v5678_v16 = vand.u32 4294901760, %v3807_v12  ;;  %v5677_v17 = vand.u32 4294901760, %v3809_v13  ;;  %v3821_v18 = vld [vmem:[#allocation5 + $0x58] sm:$0xff]  ;;  %v3824_v20 = vld [vmem:[#allocation5 + $0x40] sm:$0xff] }
  0x2b   :  { %v5674_v19 = vand.u32 4294901760, %v3811_v14  ;;  %v3826_v21 = vld [vmem:[#allocation5 + $0x50] sm:$0xff]  ;;  %v3832_v22 = vpack.c.bf16 %v5681_v9, %v5682_v6  ;;  %v5673_v24 = vand.u32 4294901760, %v3821_v18  ;;  %v3841_v25 = vld [vmem:[#allocation5 + $0x68] sm:$0xff]  ;;  %v3843_v26 = vld [vmem:[#allocation5 + $0x78] sm:$0xff]  ;;  %v5672_v28 = vand.u32 4294901760, %v3824_v20 }
  0x2c   :  { %5972 = vst [vmem:[#allocation15_spill] sm:$0xff] %v3817_v15  ;;  %v3838_v23 = vpack.c.bf16 %v5679_v11, %v5680_v10  ;;  %2802 = vmatprep.subr.bf16.mxu0 %v3817_v15  ;;  %3186 = vmatprep.subr.bf16.mxu1 %v3817_v15  ;;  %v3852_v27 = vpack.c.bf16 %v5677_v17, %v5678_v16  ;;  %v5671_v29 = vand.u32 4294901760, %v3826_v21  ;;  %v5670_v31 = vand.u32 4294901760, %v3841_v25  ;;  %v3866_v33 = vld [vmem:[#allocation5 + $0x60] sm:$0xff]  ;;  %v3868_v34 = vld [vmem:[#allocation5 + $0x70] sm:$0xff]  ;;  %v3871_v35 = vld [vmem:[#allocation5 + $0x88] sm:$0xff] }
  0x2d   :  { %5973 = vst [vmem:[#allocation16_spill] sm:$0xff] %v3832_v22  ;;  %2804 = vmatpush1.bf16.msra.mxu0 %v3832_v22  ;;  %3188 = vmatpush1.bf16.msra.mxu1 %v3832_v22  ;;  %v3862_v30 = vpack.c.bf16 %v5673_v24, %v5674_v19  ;;  %v5667_v32 = vand.u32 4294901760, %v3843_v26  ;;  %v3873_v36 = vld [vmem:[#allocation5 + $0x98] sm:$0xff]  ;;  %v5666_v38 = vand.u32 4294901760, %v3866_v33  ;;  %v5665_v39 = vand.u32 4294901760, %v3868_v34  ;;  %v3894_v43 = vld [vmem:[#allocation5 + $0x80] sm:$0xff] }
  0x2e   :  { %5974 = vst [vmem:[#allocation17_spill] sm:$0xff] %v3838_v23  ;;  %5975 = vst [vmem:[#allocation18_spill] sm:$0xff] %v3852_v27  ;;  %2806 = vmatprep.subr.bf16.mxu0 %v3838_v23  ;;  %3190 = vmatprep.subr.bf16.mxu1 %v3838_v23  ;;  %v3880_v37 = vpack.c.bf16 %v5671_v29, %v5672_v28  ;;  %v5664_v41 = vand.u32 4294901760, %v3871_v35  ;;  %v5663_v42 = vand.u32 4294901760, %v3873_v36  ;;  %v3896_v44 = vld [vmem:[#allocation5 + $0x90] sm:$0xff]  ;;  %v3899_v45 = vld [vmem:[#allocation5 + $0xa8] sm:$0xff]  ;;  %v110_v60 = vunpack.c.0.s8 %v109_v48 }
  0x2f   :  { %5976 = vst [vmem:[#allocation19_spill] sm:$0xff] %v3862_v30  ;;  %v3890_v40 = vpack.c.bf16 %v5667_v32, %v5670_v31  ;;  %v3901_v46 = vld [vmem:[#allocation5 + $0xb8] sm:$0xff]  ;;  %v3908_v50 = vpack.c.bf16 %v5665_v39, %v5666_v38  ;;  %v5669_v51 = vand.u32 4294901760, %v3894_v43  ;;  %v5668_v52 = vand.u32 4294901760, %v3896_v44  ;;  %v3912_v53 = vld [vmem:[#allocation5 + $0xa0] sm:$0xff]  ;;  %v3914_v54 = vld [vmem:[#allocation5 + $0xb0] sm:$0xff] }
  0x30   :  { %5977 = vst [vmem:[#allocation20_spill] sm:$0xff] %v3880_v37  ;;  %v3922_v55 = vpack.c.bf16 %v5663_v42, %v5664_v41  ;;  %v5676_v56 = vand.u32 4294901760, %v3899_v45  ;;  %v5675_v57 = vand.u32 4294901760, %v3901_v46  ;;  %v3927_v58 = vld [vmem:[#allocation5 + $0xc8] sm:$0xff]  ;;  %v3929_v59 = vld [vmem:[#allocation5 + $0xd8] sm:$0xff]  ;;  %v112_v61 = vshrl.u32 %v111_v49, 7 }
  0x31   :  { %2808 = vmatpush1.bf16.msra.mxu0 %v3852_v27  ;;  %3192 = vmatpush1.bf16.msra.mxu1 %v3852_v27  ;;  %5978 = vst [vmem:[#allocation21_spill] sm:$0xff] %v3890_v40  ;;  %5979 = vst [vmem:[#allocation22_spill] sm:$0xff] %v3908_v50  ;;  %v5685_v62 = vand.u32 4294901760, %v3912_v53  ;;  %v5684_v63 = vand.u32 4294901760, %v3914_v54  ;;  %v3933_v47 = vld [vmem:[#allocation5 + $0xc0] sm:$0xff]  ;;  %v3935_v42 = vld [vmem:[#allocation5 + $0xd0] sm:$0xff]  ;;  %v3942_v41 = vpack.c.bf16 %v5668_v52, %v5669_v51 }
  0x32   :  { %2810 = vmatprep.subr.bf16.mxu0 %v3862_v30  ;;  %3194 = vmatprep.subr.bf16.mxu1 %v3862_v30  ;;  %5980 = vst [vmem:[#allocation23_spill] sm:$0xff] %v3922_v55  ;;  %5981 = vst [vmem:[#allocation24_spill] sm:$0xff] %v3935_v42  ;;  %v3944_v39 = vld [vmem:[#allocation5 + $0xe8] sm:$0xff]  ;;  %v3946_v48 = vld [vmem:[#allocation5 + $0xf8] sm:$0xff]  ;;  %v3956_v38 = vpack.c.bf16 %v5675_v57, %v5676_v56  ;;  %v5689_v32 = vand.u32 4294901760, %v3927_v58  ;;  %v5688_v52 = vand.u32 4294901760, %v3929_v59 }
  0x33   :  { %5982 = vst [vmem:[#allocation25_spill] sm:$0xff] %v3942_v41  ;;  %5983 = vst [vmem:[#allocation26_spill] sm:$0xff] %v3944_v39  ;;  %v3948_v49 = vld [vmem:[#allocation5 + $0xe0] sm:$0xff]  ;;  %v3960_v51 = vld [vmem:[#allocation5 + $0xf0] sm:$0xff]  ;;  %v3973_v56 = vsub.s32 %v110_v60, %v112_v61  ;;  %v3979_v17 = vpack.c.bf16 %v5684_v63, %v5685_v62  ;;  %v6004_v4 = vand.u32 4294901760, %v3944_v39  ;;  %s2772_s14 = sshll.u32 %s3730_s1, 4  ;;  %s2773_s14 = int_to_ptr.vmem [resolvable:$true] %s2772_s14 }
  0x34   :  { %5984 = vst [vmem:[#allocation27_spill] sm:$0xff] %v3946_v48  ;;  %5985 = vst [vmem:[#allocation28_spill] sm:$0xff] %v3948_v49  ;;  %v3962_v31 = vld [vmem:[#allocation5 + $0x108] sm:$0xff]  ;;  %v3964_v29 = vld [vmem:[#allocation5 + $0x118] sm:$0xff]  ;;  %v4004_v11 = vpack.c.bf16 %v5688_v52, %v5689_v32  ;;  %v6001_v52 = vand.u32 4294901760, %v3933_v47  ;;  %v6002_v32 = vand.u32 4294901760, %v3935_v42  ;;  %p3656_p3 = scmp.lt.s32.totalorder %s2773_s14, %s2773_s14 }
  0x35   :  { %2812 = vmatpush1.bf16.msra.mxu0 %v3880_v37  ;;  %3196 = vmatpush1.bf16.msra.mxu1 %v3880_v37  ;;  %5986 = vst [vmem:[#allocation29_spill] sm:$0xff] %v3956_v38  ;;  %5987 = vst [vmem:[#allocation30_spill] sm:$0xff] %v3960_v51  ;;  %v3969_v19 = vld [vmem:[#allocation5 + $0x100] sm:$0xff]  ;;  %v3971_v57 = vld [vmem:[#allocation5 + $0x110] sm:$0xff]  ;;  %s3731_s15 = smov [#allocation10]   ;;  %s3651_s17 = scalar_lea.vmem %s2773_s14, 64 }
  0x36   :  { %2814 = vmatprep.subr.bf16.mxu0 %v3890_v40  ;;  %3198 = vmatprep.subr.bf16.mxu1 %v3890_v40  ;;  %5988 = vst [vmem:[#allocation31_spill] sm:$0xff] %v3962_v31  ;;  %5989 = vst [vmem:[#allocation32_spill] sm:$0xff] %v3964_v29  ;;  %v3983_v10 = vld [vmem:[#allocation5 + $0x128] sm:$0xff]  ;;  %v3985_v9 = vld [vmem:[#allocation5 + $0x138] sm:$0xff]  ;;  %v4023_v61 = vpack.c.bf16 %v6002_v32, %v6001_v52  ;;  %v6010_v32 = vand.u32 4294901760, %v3948_v49  ;;  %v6011_v52 = vand.u32 4294901760, %v3960_v51  ;;  %p3652_p2 = scmp.ne.s32.totalorder %s2773_s14, %s3651_s17  ;;  %p3657_p4 = scmp.lt.s32.totalorder %s3651_s17, %s3651_s17 }
  0x37   :  { %5990 = vst [vmem:[#allocation33_spill] sm:$0xff] %v3969_v19  ;;  %5991 = vst [vmem:[#allocation34_spill] sm:$0xff] %v3971_v57  ;;  %v3987_v6 = vld.sshfl [vmem:[#allocation2] sm:$0x33 pattern:$0x76325410] }
  0x38   :  { %5992 = vst [vmem:[#allocation35_spill] sm:$0xff] %v3973_v56  ;;  %5993 = vst [vmem:[#allocation36_spill] sm:$0xff] %v3979_v17  ;;  %v3994_v62 = vld [vmem:[#allocation5 + $0x120] sm:$0xff]  ;;  %v3996_v3 = vld [vmem:[#allocation5 + $0x130] sm:$0xff]  ;;  %v4044_v37 = vpack.c.bf16 %v6011_v52, %v6010_v32  ;;  %v115_v22 = vcombine.high %v3987_v6, %v3987_v6  ;;  %v6019_v32 = vand.u32 4294901760, %v3969_v19  ;;  %v6020_v52 = vand.u32 4294901760, %v3971_v57  ;;  %p3658_p5 = por %p3657_p4, %p3656_p3 }
  0x39   :  { %2816 = vmatpush1.bf16.msra.mxu0 %v3908_v50  ;;  %3200 = vmatpush1.bf16.msra.mxu1 %v3908_v50  ;;  %5994 = vst [vmem:[#allocation37_spill] sm:$0xff] %v3983_v10  ;;  %5995 = vst [vmem:[#allocation38_spill] sm:$0xff] %v3985_v9  ;;  %v4008_v60 = vld [vmem:[#allocation5 + $0x148] sm:$0xff]  ;;  %v4013_v24 = vld [vmem:[#allocation5 + $0x158] sm:$0xff]  ;;  %v6025_v57 = vand.u32 4294901760, %v3985_v9  ;;  %s2782_s16 = sshll.u32 %s3731_s15, 4  ;;  %s2783_s16 = int_to_ptr.vmem [resolvable:$true] %s2782_s16 }
  0x3a   :  { %2818 = vmatprep.subr.bf16.mxu0 %v3922_v55  ;;  %3202 = vmatprep.subr.bf16.mxu1 %v3922_v55  ;;  %5996 = vst [vmem:[#allocation39_spill] sm:$0xff] %v3994_v62  ;;  %5997 = vst [vmem:[#allocation40_spill] sm:$0xff] %v3996_v3  ;;  %v4015_v28 = vld [vmem:[#allocation5 + $0x140] sm:$0xff]  ;;  %v4017_v56 = vld [vmem:[#allocation5 + $0x150] sm:$0xff]  ;;  %v4093_v49 = vand.u32 4294901760, %v115_v22  ;;  %v6034_v39 = vand.u32 4294901760, %v4008_v60  ;;  %p3659_p6 = pnand %p3658_p5, %p3652_p2 }
  0x3b   :  { %5998 = vst [vmem:[#allocation41_spill] sm:$0xff] %v4004_v11  ;;  %5999 = vst [vmem:[#allocation42_spill] sm:$0xff] %v4013_v24  ;;  %v4033_v55 = vld [vmem:[#allocation5 + $0x168] sm:$0xff]  ;;  %v4035_v50 = vld [vmem:[#allocation5 + $0x178] sm:$0xff] }
  0x3c   :  { %6000 = vst [vmem:[#allocation43_spill] sm:$0xff] %v4017_v56  ;;  %6003 = vst [vmem:[#allocation44_spill] sm:$0xff] %v4023_v61  ;;  %v4037_v40 = vld [vmem:[#allocation5 + $0x160] sm:$0xff]  ;;  %v4053_v30 = vld [vmem:[#allocation5 + $0x170] sm:$0xff]  ;;  %v6040_v63 = vand.u32 4294901760, %v4033_v55 }
  0x3d   :  { %2820 = vmatpush1.bf16.msra.mxu0 %v3942_v41  ;;  %3204 = vmatpush1.bf16.msra.mxu1 %v3942_v41  ;;  %6007 = vst [vmem:[#allocation46_spill] sm:$0xff] %v4033_v55  ;;  %6008 = vst [vmem:[#allocation47_spill] sm:$0xff] %v4035_v50  ;;  %v4055_v27 = vld [vmem:[#allocation5 + $0x188] sm:$0xff]  ;;  %v4057_v23 = vld [vmem:[#allocation5 + $0x198] sm:$0xff] }
  0x3e   :  { %2822 = vmatprep.subr.bf16.mxu0 %v3956_v38  ;;  %3206 = vmatprep.subr.bf16.mxu1 %v3956_v38  ;;  %v6005_v38 = vand.u32 4294901760, %v3946_v48  ;;  %6009 = vst [vmem:[#allocation48_spill] sm:$0xff] %v4037_v40  ;;  %6012 = vst [vmem:[#allocation49_spill] sm:$0xff] %v4044_v37  ;;  %v4076_v51 = vld [vmem:[#allocation5 + $0x1a8] sm:$0xff]  ;;  %v4089_v15 = vld [vmem:[#allocation5 + $0x1a0] sm:$0xff] }
  0x3f   :  { %6016 = vst [vmem:[#allocation51_spill] sm:$0xff] %v4053_v30  ;;  %6017 = vst [vmem:[#allocation52_spill] sm:$0xff] %v4055_v27  ;;  %v4091_v19 = vld [vmem:[#allocation5 + $0x1b0] sm:$0xff]  ;;  %v4108_v42 = vld [vmem:[#allocation5 + $0x1c8] sm:$0xff] }
  0x40   :  { %v4029_v41 = vpack.c.bf16 %v6005_v38, %v6004_v4  ;;  %v6013_v4 = vand.u32 4294901760, %v3962_v31  ;;  %v6014_v38 = vand.u32 4294901760, %v3964_v29  ;;  %6018 = vst [vmem:[#allocation53_spill] sm:$0xff] %v4057_v23  ;;  %v4072_v29 = vld [vmem:[#allocation5 + $0x180] sm:$0xff]  ;;  %v4074_v31 = vld [vmem:[#allocation5 + $0x190] sm:$0xff]  ;;  %6023 = vst [vmem:[#allocation56_spill] sm:$0xff] %v4076_v51 }
  0x41   :  { %2824 = vmatpush1.bf16.msra.mxu0 %v3979_v17  ;;  %3208 = vmatpush1.bf16.msra.mxu1 %v3979_v17  ;;  %6022 = vst [vmem:[#allocation55_spill] sm:$0xff] %v4074_v31  ;;  %v6024_v17 = vand.u32 4294901760, %v3983_v10  ;;  %6027 = vst [vmem:[#allocation58_spill] sm:$0xff] %v4089_v15  ;;  %v6031_v10 = vand.u32 4294901760, %v3996_v3  ;;  %v4140_v9 = vld [vmem:[#allocation5 + $0x1c0] sm:$0xff]  ;;  %v4153_v55 = vld [vmem:[#allocation5 + $0x1e8] sm:$0xff] }
  0x42   :  { %6006 = vst [vmem:[#allocation45_spill] sm:$0xff] %v4029_v41  ;;  %v4050_v16 = vpack.c.bf16 %v6014_v38, %v6013_v4  ;;  %2826 = vmatprep.subr.bf16.mxu0 %v4004_v11  ;;  %v4067_v4 = vpack.c.bf16 %v6020_v52, %v6019_v32  ;;  %3210 = vmatprep.subr.bf16.mxu1 %v4004_v11  ;;  %v4087_v38 = vld [vmem:[#allocation5 + $0x1b8] sm:$0xff]  ;;  %6028 = vst [vmem:[#allocation59_spill] sm:$0xff] %v4091_v19  ;;  %v6030_v11 = vand.u32 4294901760, %v3994_v62 }
  0x43   :  { %v4083_v32 = vpack.c.bf16 %v6025_v57, %v6024_v17  ;;  %6029 = vst [vmem:[#allocation60_spill] sm:$0xff] %v4093_v49  ;;  %v4110_v62 = vld [vmem:[#allocation5 + $0x1d8] sm:$0xff]  ;;  %v6035_v57 = vand.u32 4294901760, %v4013_v24  ;;  %v6037_v17 = vand.u32 4294901760, %v4015_v28  ;;  %v6041_v52 = vand.u32 4294901760, %v4035_v50 }
  0x44   :  { %6015 = vst [vmem:[#allocation50_spill] sm:$0xff] %v4050_v16  ;;  %6021 = vst [vmem:[#allocation54_spill] sm:$0xff] %v4067_v4  ;;  %v4099_v48 = vpack.c.bf16 %v6031_v10, %v6030_v11  ;;  %v4113_v10 = vsub.f32 %v115_v22, %v4093_v49  ;;  %v6043_v24 = vand.u32 4294901760, %v4037_v40  ;;  %v4173_v40 = vand.u32 4294901760, %v3987_v6 }
  0x45   :  { %6026 = vst [vmem:[#allocation57_spill] sm:$0xff] %v4083_v32  ;;  %2828 = vmatpush1.bf16.msra.mxu0 %v4023_v61  ;;  %3212 = vmatpush1.bf16.msra.mxu1 %v4023_v61  ;;  %v4126_v22 = vpack.c.bf16 %v6035_v57, %v6034_v39  ;;  %v6038_v61 = vand.u32 4294901760, %v4017_v56  ;;  %v4138_v11 = vpack.c.bf16 %v6041_v52, %v6040_v63  ;;  %v6044_v39 = vand.u32 4294901760, %v4053_v30  ;;  %v4155_v63 = vld [vmem:[#allocation5 + $0x1f8] sm:$0xff] }
  0x46   :  { %6032 = vst [vmem:[#allocation61_spill] sm:$0xff] %v4099_v48  ;;  %6033 = vst [vmem:[#allocation62_spill] sm:$0xff] %v4113_v10  ;;  %2830 = vmatprep.subr.bf16.mxu0 %v4029_v41  ;;  %3214 = vmatprep.subr.bf16.mxu1 %v4029_v41  ;;  %v6046_v52 = vand.u32 4294901760, %v3789_v0  ;;  %v6053_v50 = vand.u32 4294901760, %v3791_v1 }
  0x47   :  { %6036 = vst [vmem:[#allocation63_spill] sm:$0xff] %v4126_v22  ;;  %v4132_v3 = vpack.c.bf16 %v6038_v61, %v6037_v17  ;;  %6042 = vst [vmem:[#allocation65_spill] sm:$0xff] %v4138_v11  ;;  %v4147_v57 = vpack.c.bf16 %v6044_v39, %v6043_v24  ;;  %v4151_v17 = vld [vmem:[#allocation5 + $0x1d0] sm:$0xff]  ;;  %v6048_v24 = vand.u32 4294901760, %v4055_v27  ;;  %v6049_v39 = vand.u32 4294901760, %v4057_v23 }
  0x48   :  { %v4160_v41 = vsub.f32 %v3789_v0, %v6046_v52  ;;  %v6051_v61 = vand.u32 4294901760, %v4113_v10  ;;  %6052 = vst [vmem:[#allocation69_spill] sm:$0xff] %v4173_v40  ;;  %v4178_v0 = vsub.f32 %v3791_v1, %v6053_v50  ;;  %v6055_v52 = vand.u32 4294901760, %v4072_v29 }
  0x49   :  { %6039 = vst [vmem:[#allocation64_spill] sm:$0xff] %v4132_v3  ;;  %6045 = vst [vmem:[#allocation66_spill] sm:$0xff] %v4147_v57  ;;  %2832 = vmatpush1.bf16.msra.mxu0 %v4044_v37  ;;  %v4167_v56 = vpack.c.bf16 %v6049_v39, %v6048_v24  ;;  %3216 = vmatpush1.bf16.msra.mxu1 %v4044_v37  ;;  %v6056_v24 = vand.u32 4294901760, %v4074_v31  ;;  %v6061_v27 = vand.u32 4294901760, %v4089_v15  ;;  %v6062_v1 = vand.u32 4294901760, %v4091_v19  ;;  %v4211_v19 = vld [vmem:[#allocation5 + $0x1e0] sm:$0xff] }
  0x4a   :  { %6047 = vst [vmem:[#allocation67_spill] sm:$0xff] %v4160_v41  ;;  %v249_v30 = vsub.f32 %v4113_v10, %v6051_v61  ;;  %6054 = vst [vmem:[#allocation70_spill] sm:$0xff] %v4178_v0  ;;  %2834 = vmatprep.subr.bf16.mxu0 %v4050_v16  ;;  %v6058_v61 = vand.u32 4294901760, %v4076_v51  ;;  %v6059_v10 = vand.u32 4294901760, %v4087_v38  ;;  %3218 = vmatprep.subr.bf16.mxu1 %v4050_v16  ;;  %v6069_v37 = vand.u32 4294901760, %v3793_v2 }
  0x4b   :  { %6050 = vst [vmem:[#allocation68_spill] sm:$0xff] %v4167_v56  ;;  %v4186_v39 = vpack.c.bf16 %v6056_v24, %v6055_v52  ;;  %v4198_v50 = vpack.c.bf16 %v6062_v1, %v6061_v27  ;;  %6067 = vst [vmem:[#allocation75_spill] sm:$0xff] %v4211_v19  ;;  %v4213_v27 = vld [vmem:[#allocation5 + $0x1f0] sm:$0xff]  ;;  %v6071_v24 = vand.u32 4294901760, %v3797_v5  ;;  %v6074_v1 = vand.u32 4294901760, %v3800_v7 }
  0x4c   :  { %v4192_v23 = vpack.c.bf16 %v6059_v10, %v6058_v61  ;;  %v250_v51 = vand.u32 4294901760, %v249_v30  ;;  %v6064_v10 = vand.u32 4294901760, %v4108_v42  ;;  %v6065_v61 = vand.u32 4294901760, %v4110_v62  ;;  %6068 = vst [vmem:[#allocation76_spill] sm:$0xff] %v4213_v27 }
  0x4d   :  { %6057 = vst [vmem:[#allocation71_spill] sm:$0xff] %v4186_v39  ;;  %6063 = vst [vmem:[#allocation73_spill] sm:$0xff] %v4198_v50  ;;  %v4219_v31 = vsub.f32 %v3793_v2, %v6069_v37  ;;  %v4224_v30 = vsub.f32 %v3797_v5, %v6071_v24  ;;  %2836 = vmatpush1.bf16.msra.mxu0 %v4067_v4  ;;  %v4235_v52 = vsub.f32 %v3800_v7, %v6074_v1 }
  0x4e   :  { %6060 = vst [vmem:[#allocation72_spill] sm:$0xff] %v4192_v23  ;;  %v4209_v15 = vpack.c.bf16 %v6065_v61, %v6064_v10  ;;  %251 = vmatprep.mubr.f32.mxu0 %v250_v51  ;;  %v4230_v61 = vsub.f32 %v3987_v6, %v4173_v40  ;;  %v6076_v2 = vand.u32 4294901760, %v3802_v8  ;;  %2838 = vmatprep.subr.bf16.mxu0 %v4083_v32  ;;  %v6078_v5 = vand.u32 4294901760, %v3807_v12 }
  0x4f   :  { %6070 = vst [vmem:[#allocation77_spill] sm:$0xff] %v4219_v31  ;;  %6072 = vst [vmem:[#allocation78_spill] sm:$0xff] %v4224_v30  ;;  %v6080_v6 = vand.u32 4294901760, %v3809_v13  ;;  %v6082_v7 = vand.u32 4294901760, %v3811_v14  ;;  %3220 = vmatpush1.bf16.msra.mxu1 %v4067_v4  ;;  %v6093_v16 = vand.u32 4294901760, %v3826_v21 }
  0x50   :  { %6066 = vst [vmem:[#allocation74_spill] sm:$0xff] %v4209_v15  ;;  %6073 = vst [vmem:[#allocation79_spill] sm:$0xff] %v4230_v61  ;;  %v4240_v37 = vsub.f32 %v3802_v8, %v6076_v2  ;;  %v4246_v51 = vsub.f32 %v3807_v12, %v6078_v5  ;;  %v6083_v8 = vand.u32 4294901760, %v4140_v9  ;;  %v6084_v2 = vand.u32 4294901760, %v4151_v17  ;;  %3222 = vmatprep.subr.bf16.mxu1 %v4083_v32 }
  0x51   :  { %6075 = vst [vmem:[#allocation80_spill] sm:$0xff] %v4235_v52  ;;  %v4251_v24 = vsub.f32 %v3809_v13, %v6080_v6  ;;  %v4256_v1 = vsub.f32 %v3811_v14, %v6082_v7  ;;  %v6086_v13 = vand.u32 4294901760, %v3821_v18  ;;  %v6087_v14 = vand.u32 4294901760, %v4153_v55  ;;  %2840 = vmatpush1.bf16.msra.mxu0 %v4099_v48 }
  0x52   :  { %6077 = vst [vmem:[#allocation81_spill] sm:$0xff] %v4240_v37  ;;  %6079 = vst [vmem:[#allocation82_spill] sm:$0xff] %v4246_v51  ;;  %v4263_v10 = vpack.c.bf16 %v6084_v2, %v6083_v8  ;;  %v6088_v7 = vand.u32 4294901760, %v4155_v63  ;;  %v6090_v8 = vand.u32 4294901760, %v4160_v41  ;;  %2842 = vmatprep.subr.bf16.mxu0 %v4126_v22  ;;  %v6092_v12 = vand.u32 4294901760, %v3824_v20 }
  0x53   :  { %6081 = vst [vmem:[#allocation83_spill] sm:$0xff] %v4251_v24  ;;  %v4270_v6 = vsub.f32 %v3821_v18, %v6086_v13  ;;  %v6091_v18 = vand.u32 4294901760, %v4178_v0  ;;  %3224 = vmatpush1.bf16.msra.mxu1 %v4099_v48  ;;  %v6095_v5 = vand.u32 4294901760, %v3843_v26 }
  0x54   :  { %6085 = vst [vmem:[#allocation84_spill] sm:$0xff] %v4263_v10  ;;  %v4277_v4 = vpack.c.bf16 %v6088_v7, %v6087_v14  ;;  %v266_v2 = vsub.f32 %v4160_v41, %v6090_v8  ;;  %v4298_v40 = vsub.f32 %v3824_v20, %v6092_v12  ;;  %v4305_v14 = vsub.f32 %v3826_v21, %v6093_v16 }
  0x55   :  { %v278_v13 = vsub.f32 %v4178_v0, %v6091_v18  ;;  %v6094_v7 = vand.u32 4294901760, %v3841_v25  ;;  %v4315_v32 = vsub.f32 %v3843_v26, %v6095_v5  ;;  %3226 = vmatprep.subr.bf16.mxu1 %v4126_v22  ;;  %v6096_v20 = vand.u32 4294901760, %v4211_v19  ;;  %2844 = vmatpush1.bf16.msra.mxu0 %v4132_v3 }
  0x56   :  { %6089 = vst [vmem:[#allocation85_spill] sm:$0xff] %v4277_v4  ;;  %v6097_v12 = vand.u32 4294901760, %v4213_v27  ;;  %v267_v16 = vand.u32 4294901760, %v266_v2  ;;  %v6099_v21 = vand.u32 4294901760, %v4219_v31  ;;  %v6101_v5 = vand.u32 4294901760, %v4230_v61  ;;  %2846 = vmatprep.subr.bf16.mxu0 %v4138_v11  ;;  %v6175_v27 = vld [vmem:[#allocation31_spill] sm:$0xff] }
  0x57   :  { %v4310_v8 = vsub.f32 %v3841_v25, %v6094_v7  ;;  %v6100_v25 = vand.u32 4294901760, %v4224_v30  ;;  %v279_v26 = vand.u32 4294901760, %v278_v13  ;;  %v6105_v13 = vand.u32 4294901760, %v4251_v24  ;;  %3228 = vmatpush1.bf16.msra.mxu1 %v4132_v3 }
  0x58   :  { %v4322_v18 = vpack.c.bf16 %v6097_v12, %v6096_v20  ;;  %v272_v48 = vsub.f32 %v4219_v31, %v6099_v21  ;;  %v4334_v22 = vsub.f32 %v4230_v61, %v6101_v5  ;;  %v6102_v20 = vand.u32 4294901760, %v4235_v52  ;;  %3230 = vmatprep.subr.bf16.mxu1 %v4138_v11 }
  0x59   :  { %v284_v7 = vsub.f32 %v4224_v30, %v6100_v25  ;;  %v6103_v12 = vand.u32 4294901760, %v4240_v37  ;;  %v6104_v25 = vand.u32 4294901760, %v4246_v51  ;;  %v308_v31 = vsub.f32 %v4251_v24, %v6105_v13  ;;  %2848 = vmatpush1.bf16.msra.mxu0 %v4147_v57 }
  0x5a   :  { %6098 = vst [vmem:[#allocation86_spill] sm:$0xff] %v4322_v18  ;;  %v290_v2 = vsub.f32 %v4235_v52, %v6102_v20  ;;  %v6106_v5 = vand.u32 4294901760, %v4256_v1  ;;  %v273_v13 = vand.u32 4294901760, %v272_v48  ;;  %v6110_v3 = vand.u32 4294901760, %v3868_v34  ;;  %2850 = vmatprep.subr.bf16.mxu0 %v4167_v56 }
  0x5b   :  { %v302_v21 = vsub.f32 %v4240_v37, %v6103_v12  ;;  %v296_v30 = vsub.f32 %v4246_v51, %v6104_v25  ;;  %v6107_v12 = vand.u32 4294901760, %v4270_v6  ;;  %v285_v24 = vand.u32 4294901760, %v284_v7  ;;  %3232 = vmatpush1.bf16.msra.mxu1 %v4147_v57 }
  0x5c   :  { %v314_v61 = vsub.f32 %v4256_v1, %v6106_v5  ;;  %v6108_v5 = vand.u32 4294901760, %v3866_v33  ;;  %v4369_v0 = vsub.f32 %v3868_v34, %v6110_v3  ;;  %v6112_v51 = vand.u32 4294901760, %v3871_v35  ;;  %3234 = vmatprep.subr.bf16.mxu1 %v4167_v56 }
  0x5d   :  { %v326_v37 = vsub.f32 %v4270_v6, %v6107_v12  ;;  %v291_v12 = vand.u32 4294901760, %v290_v2  ;;  %v303_v25 = vand.u32 4294901760, %v302_v21  ;;  %v6114_v48 = vand.u32 4294901760, %v3873_v36  ;;  %2852 = vmatpush1.bf16.msra.mxu0 %v4186_v39 }
  0x5e   :  { %v4364_v20 = vsub.f32 %v3866_v33, %v6108_v5  ;;  %6111 = vst [vmem:[#allocation88_spill] sm:$0xff] %v4369_v0  ;;  %v4375_v52 = vsub.f32 %v3871_v35, %v6112_v51  ;;  %v297_v33 = vand.u32 4294901760, %v296_v30  ;;  %v309_v5 = vand.u32 4294901760, %v308_v31  ;;  %2854 = vmatprep.subr.bf16.mxu0 %v4192_v23 }
  0x5f   :  { %v4380_v7 = vsub.f32 %v3873_v36, %v6114_v48  ;;  %v315_v3 = vand.u32 4294901760, %v314_v61  ;;  %v6116_v34 = vand.u32 4294901760, %v4298_v40  ;;  %v327_v21 = vand.u32 4294901760, %v326_v37  ;;  %3236 = vmatpush1.bf16.msra.mxu1 %v4186_v39 }
  0x60   :  { %6109 = vst [vmem:[#allocation87_spill] sm:$0xff] %v4364_v20  ;;  %6113 = vst [vmem:[#allocation89_spill] sm:$0xff] %v4375_v52  ;;  %v6117_v35 = vand.u32 4294901760, %v4305_v14  ;;  %v6118_v11 = vand.u32 4294901760, %v4310_v8  ;;  %v6119_v48 = vand.u32 4294901760, %v4315_v32  ;;  %v4397_v30 = vpack.c.bf16 %v279_v26, %v267_v16  ;;  %3238 = vmatprep.subr.bf16.mxu1 %v4192_v23 }
  0x61   :  { %6115 = vst [vmem:[#allocation90_spill] sm:$0xff] %v4380_v7  ;;  %v320_v2 = vsub.f32 %v4298_v40, %v6116_v34  ;;  %v6120_v34 = vand.u32 4294901760, %v3894_v43  ;;  %v4408_v57 = vpack.c.bf16 %v285_v24, %v273_v13  ;;  %v5808_v16 = vand.u32 4294901760, %v4380_v7  ;;  %2856 = vmatpush1.bf16.msra.mxu0 %v4198_v50 }
  0x62   :  { %v332_v51 = vsub.f32 %v4305_v14, %v6117_v35  ;;  %v338_v36 = vsub.f32 %v4310_v8, %v6118_v11  ;;  %v350_v31 = vsub.f32 %v4315_v32, %v6119_v48  ;;  %v4413_v26 = vpack.c.bf16 %v303_v25, %v291_v12  ;;  %2858 = vmatprep.subr.bf16.mxu0 %v4209_v15 }
  0x63   :  { %v4404_v35 = vsub.f32 %v3894_v43, %v6120_v34  ;;  %6122 = vst [vmem:[#allocation92_spill] sm:$0xff] %v4408_v57  ;;  %v4415_v37 = vpack.c.bf16 %v309_v5, %v297_v33  ;;  %v321_v61 = vand.u32 4294901760, %v320_v2  ;;  %v6125_v43 = vand.u32 4294901760, %v3896_v44  ;;  %3240 = vmatpush1.bf16.msra.mxu1 %v4198_v50 }
  0x64   :  { %6123 = vst [vmem:[#allocation93_spill] sm:$0xff] %v4413_v26  ;;  %v4423_v24 = vpack.c.bf16 %v327_v21, %v315_v3  ;;  %v333_v13 = vand.u32 4294901760, %v332_v51  ;;  %v339_v11 = vand.u32 4294901760, %v338_v36  ;;  %v351_v48 = vand.u32 4294901760, %v350_v31  ;;  %3242 = vmatprep.subr.bf16.mxu1 %v4209_v15  ;;  %v6155_v15 = vld [vmem:[#allocation27_spill] sm:$0xff] }
  0x65   :  { %6121 = vst [vmem:[#allocation91_spill] sm:$0xff] %v4404_v35  ;;  %6124 = vst [vmem:[#allocation94_spill] sm:$0xff] %v4415_v37  ;;  %v4420_v34 = vsub.f32 %v3896_v44, %v6125_v43  ;;  %v6128_v25 = vand.u32 4294901760, %v4364_v20  ;;  %v6129_v33 = vand.u32 4294901760, %v4369_v0  ;;  %v6130_v2 = vand.u32 4294901760, %v3899_v45  ;;  %2860 = vmatpush1.bf16.msra.mxu0 %v4263_v10 }
  0x66   :  { %6127 = vst [vmem:[#allocation96_spill] sm:$0xff] %v4423_v24  ;;  %v6132_v21 = vand.u32 4294901760, %v4375_v52  ;;  %v374_v36 = vsub.f32 %v4380_v7, %v5808_v16  ;;  %v6133_v31 = vand.u32 4294901760, %v3901_v46  ;;  %v6139_v16 = vand.u32 4294901760, %v3927_v58  ;;  %2862 = vmatprep.subr.bf16.mxu0 %v4277_v4 }
  0x67   :  { %6126 = vst [vmem:[#allocation95_spill] sm:$0xff] %v4420_v34  ;;  %v344_v12 = vsub.f32 %v4364_v20, %v6128_v25  ;;  %v356_v5 = vsub.f32 %v4369_v0, %v6129_v33  ;;  %v4436_v3 = vsub.f32 %v3899_v45, %v6130_v2  ;;  %v6135_v25 = vand.u32 4294901760, %v3912_v53  ;;  %3244 = vmatpush1.bf16.msra.mxu1 %v4263_v10  ;;  %v6162_v10 = vld [vmem:[#allocation30_spill] sm:$0xff] }
  0x68   :  { %v362_v51 = vsub.f32 %v4375_v52, %v6132_v21  ;;  %v4448_v43 = vsub.f32 %v3901_v46, %v6133_v31  ;;  %v6137_v2 = vand.u32 4294901760, %v3914_v54  ;;  %v4465_v44 = vsub.f32 %v3927_v58, %v6139_v16  ;;  %3246 = vmatprep.subr.bf16.mxu1 %v4277_v4 }
  0x69   :  { %6131 = vst [vmem:[#allocation97_spill] sm:$0xff] %v4436_v3  ;;  %v4453_v45 = vsub.f32 %v3912_v53, %v6135_v25  ;;  %v6141_v46 = vand.u32 4294901760, %v3929_v59  ;;  %v4473_v53 = vpack.c.bf16 %v333_v13, %v321_v61  ;;  %v4475_v25 = vpack.c.bf16 %v351_v48, %v339_v11  ;;  %v6152_v13 = vld [vmem:[#allocation26_spill] sm:$0xff]  ;;  %2864 = vmatpush1.bf16.msra.mxu0 %v4322_v18 }
  0x6a   :  { %6134 = vst [vmem:[#allocation98_spill] sm:$0xff] %v4448_v43  ;;  %v4460_v21 = vsub.f32 %v3914_v54, %v6137_v2  ;;  %6140 = vst [vmem:[#allocation101_spill] sm:$0xff] %v4465_v44  ;;  %v6145_v33 = vand.u32 4294901760, %v3933_v47  ;;  %v6147_v2 = vld [vmem:[#allocation24_spill] sm:$0xff]  ;;  %v357_v16 = vand.u32 4294901760, %v356_v5  ;;  %v375_v48 = vand.u32 4294901760, %v374_v36  ;;  %2866 = vmatprep.subr.bf16.mxu0 %v4397_v30 }
  0x6b   :  { %6136 = vst [vmem:[#allocation99_spill] sm:$0xff] %v4453_v45  ;;  %v4470_v31 = vsub.f32 %v3929_v59, %v6141_v46  ;;  %6143 = vst [vmem:[#allocation103_spill] sm:$0xff] %v4473_v53  ;;  %v6148_v23 = vand.u32 4294901760, %v6147_v2  ;;  %v345_v59 = vand.u32 4294901760, %v344_v12  ;;  %v6150_v46 = vand.u32 4294901760, %v4404_v35  ;;  %3248 = vmatpush1.bf16.msra.mxu1 %v4322_v18  ;;  %v6184_v18 = vld [vmem:[#allocation34_spill] sm:$0xff] }
  0x6c   :  { %6138 = vst [vmem:[#allocation100_spill] sm:$0xff] %v4460_v21  ;;  %6144 = vst [vmem:[#allocation104_spill] sm:$0xff] %v4475_v25  ;;  %v4480_v54 = vsub.f32 %v3933_v47, %v6145_v33  ;;  %v363_v47 = vand.u32 4294901760, %v362_v51  ;;  %v6151_v12 = vand.u32 4294901760, %v4420_v34  ;;  %v6156_v50 = vand.u32 4294901760, %v6155_v15  ;;  %v6159_v33 = vld [vmem:[#allocation28_spill] sm:$0xff]  ;;  %3250 = vmatprep.subr.bf16.mxu1 %v4397_v30 }
  0x6d   :  { %6142 = vst [vmem:[#allocation102_spill] sm:$0xff] %v4470_v31  ;;  %v4485_v58 = vsub.f32 %v6147_v2, %v6148_v23  ;;  %v4491_v61 = vsub.f32 %v4404_v35, %v6150_v46  ;;  %v6153_v23 = vand.u32 4294901760, %v6152_v13  ;;  %v4518_v2 = vpack.c.bf16 %v357_v16, %v345_v59 }
  0x6e   :  { %6146 = vst [vmem:[#allocation105_spill] sm:$0xff] %v4480_v54  ;;  %v380_v5 = vsub.f32 %v4420_v34, %v6151_v12  ;;  %v4515_v12 = vsub.f32 %v6155_v15, %v6156_v50  ;;  %v6160_v51 = vand.u32 4294901760, %v6159_v33  ;;  %v6163_v39 = vand.u32 4294901760, %v6162_v10 }
  0x6f   :  { %6149 = vst [vmem:[#allocation24_spill] sm:$0xff] %v4485_v58  ;;  %v4510_v11 = vsub.f32 %v6152_v13, %v6153_v23  ;;  %6158 = vst [vmem:[#allocation106_spill] sm:$0xff] %v4518_v2  ;;  %v369_v46 = vand.u32 4294901760, %v4491_v61  ;;  %v4532_v15 = vpack.c.bf16 %v375_v48, %v363_v47  ;;  %v6166_v50 = vand.u32 4294901760, %v4436_v3 }
  0x70   :  { %6157 = vst [vmem:[#allocation27_spill] sm:$0xff] %v4515_v12  ;;  %v4524_v36 = vsub.f32 %v6159_v33, %v6160_v51  ;;  %v4529_v13 = vsub.f32 %v6162_v10, %v6163_v39  ;;  %v6167_v16 = vand.u32 4294901760, %v4448_v43  ;;  %v6168_v23 = vand.u32 4294901760, %v4453_v45 }
  0x71   :  { %6154 = vst [vmem:[#allocation26_spill] sm:$0xff] %v4510_v11  ;;  %6165 = vst [vmem:[#allocation107_spill] sm:$0xff] %v4532_v15  ;;  %v386_v59 = vsub.f32 %v4436_v3, %v6166_v50  ;;  %v381_v39 = vand.u32 4294901760, %v380_v5  ;;  %v6169_v10 = vand.u32 4294901760, %v4460_v21  ;;  %v6170_v48 = vand.u32 4294901760, %v4465_v44 }
  0x72   :  { %6161 = vst [vmem:[#allocation28_spill] sm:$0xff] %v4524_v36  ;;  %6164 = vst [vmem:[#allocation30_spill] sm:$0xff] %v4529_v13  ;;  %v398_v61 = vsub.f32 %v4448_v43, %v6167_v16  ;;  %v392_v33 = vsub.f32 %v4453_v45, %v6168_v23  ;;  %v6171_v50 = vand.u32 4294901760, %v4470_v31  ;;  %v6172_v16 = vand.u32 4294901760, %v4480_v54 }
  0x73   :  { %v404_v47 = vsub.f32 %v4460_v21, %v6169_v10  ;;  %v410_v51 = vsub.f32 %v4465_v44, %v6170_v48  ;;  %v6173_v5 = vand.u32 4294901760, %v4485_v58  ;;  %v6174_v48 = vand.u32 4294901760, %v4334_v22  ;;  %v6181_v22 = vld [vmem:[#allocation33_spill] sm:$0xff] }
  0x74   :  { %v422_v4 = vsub.f32 %v4470_v31, %v6171_v50  ;;  %v416_v23 = vsub.f32 %v4480_v54, %v6172_v16  ;;  %v6176_v31 = vand.u32 4294901760, %v6175_v27  ;;  %v6178_v54 = vld [vmem:[#allocation32_spill] sm:$0xff]  ;;  %v387_v30 = vand.u32 4294901760, %v386_v59 }
  0x75   :  { %v428_v56 = vsub.f32 %v4485_v58, %v6173_v5  ;;  %257 = vmatmul.mubr.f32.vlgmr.msra.gmra.mrb[0].mxu0 %v6174_v48  ;;  %v6179_v5 = vand.u32 4294901760, %v6178_v54  ;;  %v399_v41 = vand.u32 4294901760, %v398_v61  ;;  %v6182_v48 = vand.u32 4294901760, %v6181_v22 }
  0x76   :  { %v4570_v16 = vsub.f32 %v6175_v27, %v6176_v31  ;;  %2868 = vmatpush1.bf16.msra.mxu0 %v4408_v57  ;;  %v6185_v58 = vand.u32 4294901760, %v6184_v18  ;;  %648 = vmatprep.mubr.f32.mxu0 %v4093_v49  ;;  %v393_v27 = vand.u32 4294901760, %v392_v33  ;;  %v405_v31 = vand.u32 4294901760, %v404_v47 }
  0x77   :  { %v4575_v10 = vsub.f32 %v6178_v54, %v6179_v5  ;;  %v4581_v50 = vsub.f32 %v6181_v22, %v6182_v48  ;;  %2870 = vmatprep.subr.bf16.mxu0 %v4413_v26  ;;  %v411_v54 = vand.u32 4294901760, %v410_v51  ;;  %v423_v5 = vand.u32 4294901760, %v422_v4  ;;  %v6191_v51 = vld [vmem:[#allocation37_spill] sm:$0xff] }
  0x78   :  { %6177 = vst [vmem:[#allocation31_spill] sm:$0xff] %v4570_v16  ;;  %v4586_v44 = vsub.f32 %v6184_v18, %v6185_v58  ;;  %v417_v59 = vand.u32 4294901760, %v416_v23  ;;  %v429_v61 = vand.u32 4294901760, %v428_v56  ;;  %v6187_v57 = vand.u32 4294901760, %v4510_v11 }
  0x79   :  { %6180 = vst [vmem:[#allocation32_spill] sm:$0xff] %v4575_v10  ;;  %6183 = vst [vmem:[#allocation33_spill] sm:$0xff] %v4581_v50  ;;  %v6188_v48 = vand.u32 4294901760, %v4515_v12  ;;  %v6189_v18 = vand.u32 4294901760, %v4524_v36  ;;  %v6190_v26 = vand.u32 4294901760, %v4529_v13  ;;  %v6192_v23 = vand.u32 4294901760, %v6191_v51 }
  0x7a   :  { %6186 = vst [vmem:[#allocation34_spill] sm:$0xff] %v4586_v44  ;;  %v434_v22 = vsub.f32 %v4510_v11, %v6187_v57  ;;  %2872 = vmatpush1.bf16.msra.mxu0 %v4415_v37  ;;  %v4620_v56 = vpack.c.bf16 %v399_v41, %v387_v30  ;;  %v4622_v4 = vpack.c.bf16 %v405_v31, %v393_v27  ;;  %v6200_v57 = vld [vmem:[#allocation39_spill] sm:$0xff]  ;;  %v6207_v27 = vand.u32 4294901760, %v4581_v50 }
  0x7b   :  { %v446_v19 = vsub.f32 %v4515_v12, %v6188_v48  ;;  %v440_v58 = vsub.f32 %v4524_v36, %v6189_v18  ;;  %v452_v33 = vsub.f32 %v4529_v13, %v6190_v26  ;;  %v4610_v48 = vsub.f32 %v6191_v51, %v6192_v23  ;;  %v6194_v18 = vld [vmem:[#allocation38_spill] sm:$0xff]  ;;  %2874 = vmatprep.subr.bf16.mxu0 %v4423_v24 }
  0x7c   :  { %v6195_v49 = vand.u32 4294901760, %v6194_v18  ;;  %v4618_v26 = vpack.c.bf16 %v381_v39, %v369_v46  ;;  %6198 = vst [vmem:[#allocation109_spill] sm:$0xff] %v4620_v56  ;;  %6199 = vst [vmem:[#allocation110_spill] sm:$0xff] %v4622_v4  ;;  %v6201_v47 = vand.u32 4294901760, %v6200_v57  ;;  %v4629_v51 = vpack.c.bf16 %v423_v5, %v411_v54  ;;  %v6220_v5 = vld [vmem:[#allocation43_spill] sm:$0xff] }
  0x7d   :  { %6193 = vst [vmem:[#allocation37_spill] sm:$0xff] %v4610_v48  ;;  %v4631_v23 = vpack.c.bf16 %v429_v61, %v417_v59  ;;  %v435_v13 = vand.u32 4294901760, %v434_v22  ;;  %v453_v12 = vand.u32 4294901760, %v452_v33  ;;  %v6205_v46 = vand.u32 4294901760, %v4570_v16  ;;  %v6209_v22 = vld [vmem:[#allocation40_spill] sm:$0xff] }
  0x7e   :  { %v4615_v36 = vsub.f32 %v6194_v18, %v6195_v49  ;;  %6197 = vst [vmem:[#allocation108_spill] sm:$0xff] %v4618_v26  ;;  %v4627_v37 = vsub.f32 %v6200_v57, %v6201_v47  ;;  %6203 = vst [vmem:[#allocation111_spill] sm:$0xff] %v4629_v51  ;;  %v447_v49 = vand.u32 4294901760, %v446_v19  ;;  %v441_v18 = vand.u32 4294901760, %v440_v58  ;;  %2876 = vmatpush1.bf16.msra.mxu0 %v4473_v53 }
  0x7f   :  { %6204 = vst [vmem:[#allocation112_spill] sm:$0xff] %v4631_v23  ;;  %v458_v41 = vsub.f32 %v4570_v16, %v6205_v46  ;;  %v6206_v39 = vand.u32 4294901760, %v4575_v10  ;;  %v464_v31 = vsub.f32 %v4581_v50, %v6207_v27  ;;  %v6208_v54 = vand.u32 4294901760, %v4586_v44  ;;  %2878 = vmatprep.subr.bf16.mxu0 %v4475_v25  ;;  %v6214_v46 = vld [vmem:[#allocation42_spill] sm:$0xff] }
  0x80   :  { %6196 = vst [vmem:[#allocation38_spill] sm:$0xff] %v4615_v36  ;;  %6202 = vst [vmem:[#allocation39_spill] sm:$0xff] %v4627_v37  ;;  %v6210_v58 = vand.u32 4294901760, %v6209_v22  ;;  %v6212_v57 = vand.u32 4294901760, %v4008_v60  ;;  %v6218_v59 = vand.u32 4294901760, %v4015_v28  ;;  %v6223_v25 = vld [vmem:[#allocation46_spill] sm:$0xff]  ;;  %v4682_v53 = vpack.c.bf16 %v453_v12, %v441_v18 }
  0x81   :  { %v470_v30 = vsub.f32 %v4575_v10, %v6206_v39  ;;  %v476_v19 = vsub.f32 %v4586_v44, %v6208_v54  ;;  %v6215_v39 = vand.u32 4294901760, %v6214_v46  ;;  %v4665_v54 = vpack.c.bf16 %v447_v49, %v435_v13  ;;  %v6227_v49 = vld [vmem:[#allocation47_spill] sm:$0xff] }
  0x82   :  { %v4653_v33 = vsub.f32 %v6209_v22, %v6210_v58  ;;  %v4658_v47 = vsub.f32 %v4008_v60, %v6212_v57  ;;  %v4670_v61 = vsub.f32 %v4015_v28, %v6218_v59  ;;  %v6221_v22 = vand.u32 4294901760, %v6220_v5  ;;  %6226 = vst [vmem:[#allocation116_spill] sm:$0xff] %v4682_v53  ;;  %2880 = vmatpush1.bf16.msra.mxu0 %v4518_v2 }
  0x83   :  { %v4663_v27 = vsub.f32 %v6214_v46, %v6215_v39  ;;  %6217 = vst [vmem:[#allocation114_spill] sm:$0xff] %v4665_v54  ;;  %v6224_v60 = vand.u32 4294901760, %v6223_v25  ;;  %v459_v46 = vand.u32 4294901760, %v458_v41  ;;  %v471_v13 = vand.u32 4294901760, %v470_v30  ;;  %2882 = vmatprep.subr.bf16.mxu0 %v4532_v15  ;;  %v6237_v30 = vld [vmem:[#allocation51_spill] sm:$0xff] }
  0x84   :  { %6211 = vst [vmem:[#allocation40_spill] sm:$0xff] %v4653_v33  ;;  %6213 = vst [vmem:[#allocation113_spill] sm:$0xff] %v4658_v47  ;;  %v4675_v58 = vsub.f32 %v6220_v5, %v6221_v22  ;;  %v6228_v39 = vand.u32 4294901760, %v6227_v49  ;;  %v465_v28 = vand.u32 4294901760, %v464_v31  ;;  %v477_v59 = vand.u32 4294901760, %v476_v19  ;;  %v6240_v31 = vld [vmem:[#allocation52_spill] sm:$0xff] }
  0x85   :  { %6216 = vst [vmem:[#allocation42_spill] sm:$0xff] %v4663_v27  ;;  %6219 = vst [vmem:[#allocation115_spill] sm:$0xff] %v4670_v61  ;;  %v4680_v57 = vsub.f32 %v6223_v25, %v6224_v60  ;;  %v6230_v5 = vand.u32 4294901760, %v4610_v48  ;;  %v6231_v25 = vand.u32 4294901760, %v4615_v36  ;;  %v6232_v18 = vand.u32 4294901760, %v4627_v37 }
  0x86   :  { %6222 = vst [vmem:[#allocation43_spill] sm:$0xff] %v4675_v58  ;;  %v4687_v24 = vsub.f32 %v6227_v49, %v6228_v39  ;;  %v4711_v2 = vpack.c.bf16 %v471_v13, %v459_v46  ;;  %v6241_v19 = vand.u32 4294901760, %v6240_v31  ;;  %2884 = vmatpush1.bf16.msra.mxu0 %v4618_v26  ;;  %v4725_v39 = vpack.c.bf16 %v477_v59, %v465_v28  ;;  %v6244_v46 = vld [vmem:[#allocation53_spill] sm:$0xff] }
  0x87   :  { %6225 = vst [vmem:[#allocation46_spill] sm:$0xff] %v4680_v57  ;;  %v482_v22 = vsub.f32 %v4610_v48, %v6230_v5  ;;  %v494_v12 = vsub.f32 %v4615_v36, %v6231_v25  ;;  %v488_v41 = vsub.f32 %v4627_v37, %v6232_v18  ;;  %v6233_v5 = vld [vmem:[#allocation48_spill] sm:$0xff]  ;;  %v6238_v37 = vand.u32 4294901760, %v6237_v30  ;;  %2886 = vmatprep.subr.bf16.mxu0 %v4620_v56  ;;  %v6257_v56 = vld [vmem:[#allocation55_spill] sm:$0xff] }
  0x88   :  { %6229 = vst [vmem:[#allocation47_spill] sm:$0xff] %v4687_v24  ;;  %v6234_v25 = vand.u32 4294901760, %v6233_v5  ;;  %6236 = vst [vmem:[#allocation117_spill] sm:$0xff] %v4711_v2  ;;  %v4722_v49 = vsub.f32 %v6240_v31, %v6241_v19  ;;  %v6245_v13 = vand.u32 4294901760, %v6244_v46  ;;  %v6248_v31 = vand.u32 4294901760, %v4658_v47 }
  0x89   :  { %v4717_v60 = vsub.f32 %v6237_v30, %v6238_v37  ;;  %6243 = vst [vmem:[#allocation118_spill] sm:$0xff] %v4725_v39  ;;  %v489_v37 = vand.u32 4294901760, %v488_v41  ;;  %v6247_v30 = vand.u32 4294901760, %v4653_v33  ;;  %v6249_v28 = vand.u32 4294901760, %v4663_v27 }
  0x8a   :  { %v4709_v15 = vsub.f32 %v6233_v5, %v6234_v25  ;;  %6242 = vst [vmem:[#allocation52_spill] sm:$0xff] %v4722_v49  ;;  %v483_v5 = vand.u32 4294901760, %v482_v22  ;;  %v495_v25 = vand.u32 4294901760, %v494_v12  ;;  %v4730_v18 = vsub.f32 %v6244_v46, %v6245_v13  ;;  %2888 = vmatpush1.bf16.msra.mxu0 %v4622_v4 }
  0x8b   :  { %6239 = vst [vmem:[#allocation51_spill] sm:$0xff] %v4717_v60  ;;  %v500_v36 = vsub.f32 %v4653_v33, %v6247_v30  ;;  %v506_v19 = vsub.f32 %v4658_v47, %v6248_v31  ;;  %v518_v59 = vsub.f32 %v4663_v27, %v6249_v28  ;;  %v6250_v22 = vand.u32 4294901760, %v4670_v61  ;;  %2890 = vmatprep.subr.bf16.mxu0 %v4629_v51 }
  0x8c   :  { %6235 = vst [vmem:[#allocation48_spill] sm:$0xff] %v4709_v15  ;;  %6246 = vst [vmem:[#allocation53_spill] sm:$0xff] %v4730_v18  ;;  %v6251_v46 = vand.u32 4294901760, %v4675_v58  ;;  %v6252_v13 = vand.u32 4294901760, %v4680_v57  ;;  %v6253_v31 = vand.u32 4294901760, %v4687_v24 }
  0x8d   :  { %v512_v12 = vsub.f32 %v4670_v61, %v6250_v22  ;;  %v6254_v22 = vand.u32 4294901760, %v4072_v29 }
  0x8e   :  { %v524_v41 = vsub.f32 %v4675_v58, %v6251_v46  ;;  %v530_v30 = vsub.f32 %v4680_v57, %v6252_v13  ;;  %v542_v26 = vsub.f32 %v4687_v24, %v6253_v31  ;;  %v4763_v46 = vpack.c.bf16 %v495_v25, %v483_v5  ;;  %v6260_v31 = vld [vmem:[#allocation56_spill] sm:$0xff]  ;;  %2892 = vmatpush1.bf16.msra.mxu0 %v4631_v23  ;;  %v6272_v23 = vld [vmem:[#allocation59_spill] sm:$0xff] }
  0x8f   :  { %v4760_v61 = vsub.f32 %v4072_v29, %v6254_v22  ;;  %v6258_v57 = vand.u32 4294901760, %v6257_v56  ;;  %v6261_v28 = vand.u32 4294901760, %v6260_v31  ;;  %v501_v29 = vand.u32 4294901760, %v500_v36  ;;  %2894 = vmatprep.subr.bf16.mxu0 %v4665_v54  ;;  %v6298_v54 = vld [vmem:[#allocation102_spill] sm:$0xff] }
  0x90   :  { %6256 = vst [vmem:[#allocation120_spill] sm:$0xff] %v4763_v46  ;;  %v507_v22 = vand.u32 4294901760, %v506_v19  ;;  %v519_v24 = vand.u32 4294901760, %v518_v59  ;;  %v6263_v5 = vand.u32 4294901760, %v4087_v38  ;;  %v513_v13 = vand.u32 4294901760, %v512_v12 }
  0x91   :  { %6255 = vst [vmem:[#allocation119_spill] sm:$0xff] %v4760_v61  ;;  %v4769_v58 = vsub.f32 %v6257_v56, %v6258_v57  ;;  %v4774_v27 = vsub.f32 %v6260_v31, %v6261_v28  ;;  %v525_v4 = vand.u32 4294901760, %v524_v41  ;;  %v531_v47 = vand.u32 4294901760, %v530_v30 }
  0x92   :  { %v4780_v25 = vsub.f32 %v4087_v38, %v6263_v5  ;;  %v6265_v56 = vand.u32 4294901760, %v4709_v15  ;;  %v543_v28 = vand.u32 4294901760, %v542_v26  ;;  %v6266_v31 = vand.u32 4294901760, %v4717_v60  ;;  %v6269_v5 = vld [vmem:[#allocation58_spill] sm:$0xff]  ;;  %2896 = vmatpush1.bf16.msra.mxu0 %v4682_v53  ;;  %v6297_v53 = vld [vmem:[#allocation101_spill] sm:$0xff] }
  0x93   :  { %6259 = vst [vmem:[#allocation55_spill] sm:$0xff] %v4769_v58  ;;  %6262 = vst [vmem:[#allocation56_spill] sm:$0xff] %v4774_v27  ;;  %v6267_v19 = vand.u32 4294901760, %v4722_v49  ;;  %v6268_v12 = vand.u32 4294901760, %v4730_v18  ;;  %v6273_v51 = vand.u32 4294901760, %v6272_v23  ;;  %v6274_v26 = vand.u32 4294901760, %v4108_v42  ;;  %2898 = vmatprep.subr.bf16.mxu0 %v4711_v2 }
  0x94   :  { %6264 = vst [vmem:[#allocation121_spill] sm:$0xff] %v4780_v25  ;;  %v4785_v57 = vsub.f32 %v4709_v15, %v6265_v56  ;;  %v4790_v36 = vsub.f32 %v4717_v60, %v6266_v31  ;;  %v6270_v56 = vand.u32 4294901760, %v6269_v5  ;;  %v4835_v38 = vpack.c.bf16 %v543_v28, %v531_v47 }
  0x95   :  { %v4795_v59 = vsub.f32 %v4722_v49, %v6267_v19  ;;  %v4802_v41 = vsub.f32 %v4730_v18, %v6268_v12  ;;  %v4812_v19 = vpack.c.bf16 %v501_v29, %v489_v37  ;;  %v4818_v12 = vsub.f32 %v6272_v23, %v6273_v51 }
  0x96   :  { %v4809_v31 = vsub.f32 %v6269_v5, %v6270_v56  ;;  %v4823_v30 = vsub.f32 %v4108_v42, %v6274_v26  ;;  %v4825_v18 = vpack.c.bf16 %v519_v24, %v507_v22  ;;  %v4827_v5 = vpack.c.bf16 %v525_v4, %v513_v13  ;;  %6278 = vst [vmem:[#allocation123_spill] sm:$0xff] %v4835_v38 }
  0x97   :  { %6271 = vst [vmem:[#allocation58_spill] sm:$0xff] %v4812_v19  ;;  %v537_v56 = vand.u32 4294901760, %v4785_v57  ;;  %v6277_v37 = vand.u32 4294901760, %v4110_v62  ;;  %v549_v51 = vand.u32 4294901760, %v4790_v36  ;;  %v555_v23 = vand.u32 4294901760, %v4795_v59  ;;  %2900 = vmatpush1.bf16.msra.mxu0 %v4725_v39 }
  0x98   :  { %6275 = vst [vmem:[#allocation59_spill] sm:$0xff] %v4825_v18  ;;  %6276 = vst [vmem:[#allocation122_spill] sm:$0xff] %v4827_v5  ;;  %v6279_v42 = vand.u32 4294901760, %v4760_v61  ;;  %v567_v4 = vand.u32 4294901760, %v4802_v41  ;;  %v6280_v13 = vand.u32 4294901760, %v4769_v58  ;;  %v6281_v47 = vand.u32 4294901760, %v4774_v27  ;;  %2902 = vmatprep.subr.bf16.mxu0 %v4763_v46 }
  0x99   :  { %v4833_v29 = vsub.f32 %v4110_v62, %v6277_v37  ;;  %v6282_v28 = vand.u32 4294901760, %v4780_v25  ;;  %v6283_v26 = vand.u32 4294901760, %v4140_v9  ;;  %v4876_v57 = vpack.c.bf16 %v4270_v6, %v4256_v1 }
  0x9a   :  { %v4842_v24 = vsub.f32 %v4760_v61, %v6279_v42  ;;  %v4849_v62 = vsub.f32 %v4769_v58, %v6280_v13  ;;  %v4854_v22 = vsub.f32 %v4774_v27, %v6281_v47  ;;  %v6284_v13 = vand.u32 4294901760, %v4151_v17 }
  0x9b   :  { %v590_v36 = vsub.f32 %v4780_v25, %v6282_v28  ;;  %v4866_v37 = vsub.f32 %v4140_v9, %v6283_v26  ;;  %6285 = vst [vmem:[#allocation124_spill] sm:$0xff] %v4876_v57  ;;  %v4880_v28 = vpack.c.bf16 %v4305_v14, %v4298_v40  ;;  %v6287_v41 = vand.u32 4294901760, %v4153_v55  ;;  %2904 = vmatpush1.bf16.msra.mxu0 %v4812_v19 }
  0x9c   :  { %v4872_v47 = vsub.f32 %v4151_v17, %v6284_v13  ;;  %v6288_v26 = vand.u32 4294901760, %v4155_v63  ;;  %v4894_v17 = vpack.c.bf16 %v4315_v32, %v4310_v8  ;;  %v4898_v13 = vpack.c.bf16 %v4369_v0, %v4364_v20  ;;  %v6319_v0 = vld [vmem:[#allocation115_spill] sm:$0xff]  ;;  %2906 = vmatprep.subr.bf16.mxu0 %v4825_v18 }
  0x9d   :  { %6286 = vst [vmem:[#allocation125_spill] sm:$0xff] %v4880_v28  ;;  %v4885_v9 = vsub.f32 %v4153_v55, %v6287_v41  ;;  %v4903_v59 = vpack.c.bf16 %v4380_v7, %v4375_v52  ;;  %v4907_v55 = vpack.c.bf16 %v4420_v34, %v4404_v35  ;;  %v4915_v41 = vpack.c.bf16 %v4460_v21, %v4453_v45  ;;  %v6300_v34 = vld [vmem:[#allocation105_spill] sm:$0xff]  ;;  %v6301_v35 = vld [vmem:[#allocation24_spill] sm:$0xff]  ;;  %v6306_v45 = vld [vmem:[#allocation30_spill] sm:$0xff] }
  0x9e   :  { %v4890_v42 = vsub.f32 %v4155_v63, %v6288_v26  ;;  %6289 = vst [vmem:[#allocation126_spill] sm:$0xff] %v4894_v17  ;;  %6290 = vst [vmem:[#allocation127_spill] sm:$0xff] %v4898_v13  ;;  %v4911_v63 = vpack.c.bf16 %v4448_v43, %v4436_v3  ;;  %v6295_v26 = vld [vmem:[#allocation75_spill] sm:$0xff]  ;;  %v4925_v7 = vpack.c.bf16 %v6298_v54, %v6297_v53  ;;  %v6305_v21 = vld [vmem:[#allocation28_spill] sm:$0xff]  ;;  %v573_v18 = vand.u32 4294901760, %v4849_v62 }
  0x9f   :  { %6291 = vst [vmem:[#allocation128_spill] sm:$0xff] %v4903_v59  ;;  %6292 = vst [vmem:[#allocation129_spill] sm:$0xff] %v4907_v55  ;;  %v6296_v39 = vand.u32 4294901760, %v6295_v26  ;;  %v4929_v52 = vpack.c.bf16 %v6301_v35, %v6300_v34  ;;  %v6303_v43 = vld [vmem:[#allocation27_spill] sm:$0xff]  ;;  %v4937_v46 = vpack.c.bf16 %v6306_v45, %v6305_v21  ;;  %v6310_v54 = vld [vmem:[#allocation38_spill] sm:$0xff]  ;;  %v4988_v19 = vpack.c.bf16 %v4780_v25, %v4774_v27 }
  0xa0   :  { %6293 = vst [vmem:[#allocation130_spill] sm:$0xff] %v4911_v63  ;;  %6294 = vst [vmem:[#allocation131_spill] sm:$0xff] %v4915_v41  ;;  %v4933_v3 = vpack.c.bf16 %v6303_v43, %v4510_v11  ;;  %v4949_v35 = vpack.c.bf16 %v6310_v54, %v4610_v48  ;;  %v6312_v34 = vld [vmem:[#allocation76_spill] sm:$0xff]  ;;  %v6314_v11 = vld [vmem:[#allocation39_spill] sm:$0xff]  ;;  %v5006_v25 = vpack.c.bf16 %v4890_v42, %v4885_v9  ;;  %2908 = vmatpush1.bf16.msra.mxu0 %v4827_v5 }
  0xa1   :  { %v4921_v2 = vsub.f32 %v6295_v26, %v6296_v39  ;;  %6299 = vst [vmem:[#allocation75_spill] sm:$0xff] %v4925_v7  ;;  %6302 = vst [vmem:[#allocation132_spill] sm:$0xff] %v4929_v52  ;;  %v4941_v39 = vpack.c.bf16 %v4575_v10, %v4570_v16  ;;  %v4945_v26 = vpack.c.bf16 %v4586_v44, %v4581_v50  ;;  %v6313_v53 = vand.u32 4294901760, %v6312_v34  ;;  %v6316_v21 = vld [vmem:[#allocation113_spill] sm:$0xff]  ;;  %v6317_v10 = vld [vmem:[#allocation42_spill] sm:$0xff] }
  0xa2   :  { %6304 = vst [vmem:[#allocation133_spill] sm:$0xff] %v4933_v3  ;;  %6307 = vst [vmem:[#allocation134_spill] sm:$0xff] %v4937_v46  ;;  %v4958_v45 = vpack.c.bf16 %v4653_v33, %v6314_v11  ;;  %v4962_v16 = vpack.c.bf16 %v6317_v10, %v6316_v21  ;;  %v6320_v44 = vld [vmem:[#allocation43_spill] sm:$0xff]  ;;  %v6322_v54 = vld [vmem:[#allocation46_spill] sm:$0xff]  ;;  %v4983_v10 = vpack.c.bf16 %v4769_v58, %v4760_v61  ;;  %v561_v58 = vand.u32 4294901760, %v4842_v24 }
  0xa3   :  { %6308 = vst [vmem:[#allocation135_spill] sm:$0xff] %v4941_v39  ;;  %6309 = vst [vmem:[#allocation136_spill] sm:$0xff] %v4945_v26  ;;  %v4954_v43 = vsub.f32 %v6312_v34, %v6313_v53  ;;  %v4966_v50 = vpack.c.bf16 %v6320_v44, %v6319_v0  ;;  %v6323_v48 = vld [vmem:[#allocation47_spill] sm:$0xff]  ;;  %v4975_v34 = vpack.c.bf16 %v4717_v60, %v4709_v15  ;;  %v6326_v53 = vld [vmem:[#allocation53_spill] sm:$0xff]  ;;  %v579_v61 = vand.u32 4294901760, %v4854_v22 }
  0xa4   :  { %6311 = vst [vmem:[#allocation137_spill] sm:$0xff] %v4949_v35  ;;  %6315 = vst [vmem:[#allocation76_spill] sm:$0xff] %v4958_v45  ;;  %v4971_v20 = vpack.c.bf16 %v6323_v48, %v6322_v54  ;;  %v4979_v33 = vpack.c.bf16 %v6326_v53, %v4722_v49  ;;  %v4992_v48 = vpack.c.bf16 %v4818_v12, %v4809_v31  ;;  %v591_v49 = vand.u32 4294901760, %v590_v36 }
  0xa5   :  { %6318 = vst [vmem:[#allocation138_spill] sm:$0xff] %v4962_v16  ;;  %6321 = vst [vmem:[#allocation139_spill] sm:$0xff] %v4966_v50  ;;  %v4996_v60 = vpack.c.bf16 %v4833_v29, %v4823_v30  ;;  %v5000_v53 = vpack.c.bf16 %v4872_v47, %v4866_v37  ;;  %v5010_v27 = vpack.c.bf16 %v4954_v43, %v4921_v2  ;;  %v6335_v15 = vand.u32 4294901760, %v4809_v31 }
  0xa6   :  { %6324 = vst [vmem:[#allocation140_spill] sm:$0xff] %v4971_v20  ;;  %6325 = vst [vmem:[#allocation141_spill] sm:$0xff] %v4975_v34  ;;  %v6336_v44 = vand.u32 4294901760, %v4818_v12  ;;  %v5020_v62 = vpack.c.bf16 %v549_v51, %v537_v56  ;;  %v5022_v0 = vpack.c.bf16 %v567_v4, %v555_v23  ;;  %v5911_v21 = vand.u32 4294901760, %v4866_v37  ;;  %2910 = vmatprep.subr.bf16.mxu0 %v4835_v38 }
  0xa7   :  { %6327 = vst [vmem:[#allocation142_spill] sm:$0xff] %v4979_v33  ;;  %6328 = vst [vmem:[#allocation143_spill] sm:$0xff] %v4983_v10  ;;  %v584_v54 = vsub.f32 %v4809_v31, %v6335_v15  ;;  %v6339_v22 = vand.u32 4294901760, %v4823_v30  ;;  %v6340_v36 = vand.u32 4294901760, %v4833_v29  ;;  %v5035_v51 = vpack.c.bf16 %v573_v18, %v561_v58 }
  0xa8   :  { %6329 = vst [vmem:[#allocation144_spill] sm:$0xff] %v4988_v19  ;;  %6330 = vst [vmem:[#allocation145_spill] sm:$0xff] %v4992_v48  ;;  %v596_v24 = vsub.f32 %v4818_v12, %v6336_v44  ;;  %v5037_v23 = vpack.c.bf16 %v591_v49, %v579_v61  ;;  %2912 = vmatpush1.bf16.msra.mxu0 %v5020_v62  ;;  %v6343_v38 = vand.u32 4294901760, %v4872_v47  ;;  %v6345_v18 = vand.u32 4294901760, %v4890_v42 }
  0xa9   :  { %6331 = vst [vmem:[#allocation146_spill] sm:$0xff] %v4996_v60  ;;  %6332 = vst [vmem:[#allocation147_spill] sm:$0xff] %v5000_v53  ;;  %v602_v15 = vsub.f32 %v4823_v30, %v6339_v22  ;;  %v614_v44 = vsub.f32 %v4833_v29, %v6340_v36  ;;  %v585_v4 = vand.u32 4294901760, %v584_v54  ;;  %v608_v22 = vsub.f32 %v4866_v37, %v5911_v21 }
  0xaa   :  { %6333 = vst [vmem:[#allocation148_spill] sm:$0xff] %v5006_v25  ;;  %6334 = vst [vmem:[#allocation149_spill] sm:$0xff] %v5010_v27  ;;  %v597_v11 = vand.u32 4294901760, %v596_v24  ;;  %v620_v36 = vsub.f32 %v4872_v47, %v6343_v38  ;;  %2914 = vmatprep.subr.bf16.mxu0 %v5022_v0  ;;  %v6344_v54 = vand.u32 4294901760, %v4885_v9  ;;  %v638_v24 = vsub.f32 %v4890_v42, %v6345_v18 }
  0xab   :  { %6337 = vst [vmem:[#allocation150_spill] sm:$0xff] %v5020_v62  ;;  %6338 = vst [vmem:[#allocation151_spill] sm:$0xff] %v5022_v0  ;;  %v603_v61 = vand.u32 4294901760, %v602_v15  ;;  %v615_v58 = vand.u32 4294901760, %v614_v44  ;;  %v609_v38 = vand.u32 4294901760, %v608_v22  ;;  %v6347_v56 = vand.u32 4294901760, %v4921_v2 }
  0xac   :  { %6341 = vst [vmem:[#allocation152_spill] sm:$0xff] %v5035_v51  ;;  %6342 = vst [vmem:[#allocation153_spill] sm:$0xff] %v5037_v23  ;;  %v626_v49 = vsub.f32 %v4885_v9, %v6344_v54  ;;  %v5055_v21 = vpack.c.bf16 %v597_v11, %v585_v4  ;;  %2916 = vmatpush1.bf16.msra.mxu0 %v5035_v51  ;;  %v621_v5 = vand.u32 4294901760, %v620_v36  ;;  %v6348_v15 = vand.u32 4294901760, %v4954_v43 }
  0xad   :  { %v632_v0 = vsub.f32 %v4921_v2, %v6347_v56  ;;  %2918 = vmatprep.subr.bf16.mxu0 %v5037_v23  ;;  %v5065_v54 = vpack.c.bf16 %v615_v58, %v603_v61  ;;  %v639_v18 = vand.u32 4294901760, %v638_v24  ;;  %v6353_v61 = vld [vmem:[#allocation67_spill] sm:$0xff]  ;;  %v6354_v58 = vld [vmem:[#allocation70_spill] sm:$0xff] }
  0xae   :  { %6346 = vst [vmem:[#allocation154_spill] sm:$0xff] %v5055_v21  ;;  %v644_v44 = vsub.f32 %v4954_v43, %v6348_v15  ;;  %v627_v62 = vand.u32 4294901760, %v626_v49  ;;  %v5068_v11 = vpack.c.bf16 %v621_v5, %v609_v38  ;;  %v5079_v49 = vpack.c.bf16 %v6354_v58, %v6353_v61  ;;  %v6356_v5 = vld [vmem:[#allocation77_spill] sm:$0xff]  ;;  %v6357_v24 = vld [vmem:[#allocation78_spill] sm:$0xff] }
  0xaf   :  { %6349 = vst [vmem:[#allocation155_spill] sm:$0xff] %v5065_v54  ;;  %v633_v4 = vand.u32 4294901760, %v632_v0  ;;  %v5084_v0 = vpack.c.bf16 %v6357_v24, %v6356_v5  ;;  %v6360_v38 = vld [vmem:[#allocation81_spill] sm:$0xff]  ;;  %v6404_v23 = vand.u32 4294901760, %v6357_v24 }
  0xb0   :  { %2920 = vmatpush1.bf16.msra.mxu0 %v5055_v21  ;;  %6350 = vst [vmem:[#allocation156_spill] sm:$0xff] %v5068_v11  ;;  %v645_v22 = vand.u32 4294901760, %v644_v44  ;;  %v5071_v36 = vpack.c.bf16 %v639_v18, %v627_v62  ;;  %6355 = vst [vmem:[#allocation67_spill] sm:$0xff] %v5079_v49  ;;  %v6359_v62 = vld [vmem:[#allocation80_spill] sm:$0xff]  ;;  %v6362_v44 = vld [vmem:[#allocation69_spill] sm:$0xff]  ;;  %v6403_v21 = vand.u32 4294901760, %v6356_v5 }
  0xb1   :  { %2922 = vmatprep.subr.bf16.mxu0 %v5065_v54  ;;  %6358 = vst [vmem:[#allocation70_spill] sm:$0xff] %v5084_v0  ;;  %v5089_v15 = vpack.c.bf16 %v6360_v38, %v6359_v62  ;;  %v6363_v18 = vld [vmem:[#allocation82_spill] sm:$0xff]  ;;  %v6412_v5 = vand.u32 4294901760, %v4270_v6 }
  0xb2   :  { %6351 = vst [vmem:[#allocation157_spill] sm:$0xff] %v5071_v36  ;;  %v5074_v56 = vpack.c.bf16 %v645_v22, %v633_v4  ;;  %v6364_v4 = vld [vmem:[#allocation83_spill] sm:$0xff]  ;;  %v6402_v54 = vld [vmem:[#allocation86_spill] sm:$0xff]  ;;  %v5173_v51 = vpack.c.bf16 %v6404_v23, %v6403_v21  ;;  %v6410_v21 = vld [vmem:[#allocation60_spill] sm:$0xff]  ;;  %v6411_v23 = vand.u32 4294901760, %v4256_v1 }
  0xb3   :  { %6361 = vst [vmem:[#allocation77_spill] sm:$0xff] %v5089_v15  ;;  %v5095_v22 = vpack.c.bf16 %v6364_v4, %v6363_v18  ;;  %v6417_v1 = vld [vmem:[#allocation87_spill] sm:$0xff] }
  0xb4   :  { %2924 = vmatpush1.bf16.msra.mxu0 %v5068_v11  ;;  %6352 = vst [vmem:[#allocation158_spill] sm:$0xff] %v5074_v56  ;;  %v5197_v24 = vpack.c.bf16 %v6412_v5, %v6411_v23  ;;  %v6418_v6 = vand.u32 4294901760, %v6417_v1 }
  0xb5   :  { %2926 = vmatprep.subr.bf16.mxu0 %v5071_v36  ;;  %6365 = vst [vmem:[#allocation78_spill] sm:$0xff] %v5095_v22  ;;  %v6366_v36 = vld [vmem:[#allocation62_spill] sm:$0xff] }
  0xb8   :  { %2928 = vmatpush1.bf16.msra.mxu0 %v5074_v56  ;;  %v6401_v56 = vand.u32 4294901760, %v6354_v58  ;;  %v6409_v58 = vand.u32 4294901760, %v6364_v4  ;;  %v6419_v4 = vld [vmem:[#allocation88_spill] sm:$0xff] }
  0xb9   :  { %2930 = vmatprep.subr.bf16.mxu0 %v5079_v49  ;;  %v6400_v49 = vand.u32 4294901760, %v6353_v61 }
  0xbb   :  { %650 = vmatmul.mubr.f32.vlgmr.msra.gmra.mrb[0].mxu0 %v6362_v44  ;;  %v5166_v11 = vpack.c.bf16 %v6401_v56, %v6400_v49  ;;  %v6408_v56 = vand.u32 4294901760, %v6363_v18 }
  0xbc   :  { %2932 = vmatpush1.bf16.msra.mxu0 %v5084_v0  ;;  %850 = vmatprep.mubr.f32.mxu0 %v6366_v36  ;;  %v6399_v0 = vld [vmem:[#allocation85_spill] sm:$0xff] }
  0xbd   :  { %2934 = vmatprep.subr.bf16.mxu0 %v5089_v15  ;;  %v6398_v15 = vld [vmem:[#allocation84_spill] sm:$0xff]  ;;  %v5189_v49 = vpack.c.bf16 %v6409_v58, %v6408_v56  ;;  %v6424_v58 = vld [vmem:[#allocation90_spill] sm:$0xff] }
  0xbe   :  { %v6425_v23 = vand.u32 4294901760, %v6424_v58  ;;  %v6439_v58 = vld [vmem:[#allocation100_spill] sm:$0xff] }
  0xc0   :  { %2936 = vmatpush1.bf16.msra.mxu0 %v5095_v22  ;;  %v6397_v22 = vld [vmem:[#allocation74_spill] sm:$0xff] }
  0xc1   :  { %2938 = vmatprep.subr.bf16.mxu0 %v4876_v57  ;;  %v6396_v57 = vld [vmem:[#allocation73_spill] sm:$0xff] }
  0xc4   :  { %2940 = vmatpush1.bf16.msra.mxu0 %v4880_v28  ;;  %v6395_v28 = vld [vmem:[#allocation72_spill] sm:$0xff] }
  0xc5   :  { %2942 = vmatprep.subr.bf16.mxu0 %v4894_v17  ;;  %v6394_v17 = vld [vmem:[#allocation71_spill] sm:$0xff] }
  0xc8   :  { %2944 = vmatpush1.bf16.msra.mxu0 %v4898_v13  ;;  %v6393_v13 = vld [vmem:[#allocation68_spill] sm:$0xff] }
  0xc9   :  { %2946 = vmatprep.subr.bf16.mxu0 %v4903_v59  ;;  %v6392_v59 = vld [vmem:[#allocation66_spill] sm:$0xff] }
  0xcc   :  { %2948 = vmatpush1.bf16.msra.mxu0 %v4907_v55  ;;  %v6391_v55 = vld [vmem:[#allocation65_spill] sm:$0xff] }
  0xcd   :  { %2950 = vmatprep.subr.bf16.mxu0 %v4911_v63  ;;  %v6390_v63 = vld [vmem:[#allocation64_spill] sm:$0xff] }
  0xd0   :  { %2952 = vmatpush1.bf16.msra.mxu0 %v4915_v41  ;;  %v6389_v41 = vld [vmem:[#allocation63_spill] sm:$0xff] }
  0xd1   :  { %2954 = vmatprep.subr.bf16.mxu0 %v4925_v7  ;;  %v6388_v7 = vld [vmem:[#allocation61_spill] sm:$0xff] }
  0xd4   :  { %2956 = vmatpush1.bf16.msra.mxu0 %v4929_v52  ;;  %v6387_v52 = vld [vmem:[#allocation57_spill] sm:$0xff] }
  0xd5   :  { %2958 = vmatprep.subr.bf16.mxu0 %v4933_v3  ;;  %v6386_v3 = vld [vmem:[#allocation54_spill] sm:$0xff] }
  0xd8   :  { %2960 = vmatpush1.bf16.msra.mxu0 %v4937_v46  ;;  %v6385_v46 = vld [vmem:[#allocation50_spill] sm:$0xff] }
  0xd9   :  { %2962 = vmatprep.subr.bf16.mxu0 %v4941_v39  ;;  %v6384_v39 = vld [vmem:[#allocation49_spill] sm:$0xff] }
  0xdc   :  { %2964 = vmatpush1.bf16.msra.mxu0 %v4945_v26  ;;  %v6383_v26 = vld [vmem:[#allocation45_spill] sm:$0xff] }
  0xdd   :  { %2966 = vmatprep.subr.bf16.mxu0 %v4949_v35  ;;  %v6382_v35 = vld [vmem:[#allocation44_spill] sm:$0xff] }
  0xe0   :  { %2968 = vmatpush1.bf16.msra.mxu0 %v4958_v45  ;;  %v6379_v45 = vld [vmem:[#allocation29_spill] sm:$0xff] }
  0xe1   :  { %2970 = vmatprep.subr.bf16.mxu0 %v4962_v16  ;;  %v6378_v16 = vld [vmem:[#allocation25_spill] sm:$0xff] }
  0xe4   :  { %2972 = vmatpush1.bf16.msra.mxu0 %v4966_v50  ;;  %v6367_v50 = vld [vmem:[#allocation15_spill] sm:$0xff] }
  0xe5   :  { %2974 = vmatprep.subr.bf16.mxu0 %v4971_v20  ;;  %v6368_v20 = vld [vmem:[#allocation79_spill] sm:$0xff] }
  0xe6   :  { %v6407_v61 = vand.u32 4294901760, %v6368_v20 }
  0xe8   :  { %2976 = vmatpush1.bf16.msra.mxu0 %v4975_v34  ;;  %v6369_v34 = vld [vmem:[#allocation16_spill] sm:$0xff] }
  0xe9   :  { %2978 = vmatprep.subr.bf16.mxu0 %v4979_v33  ;;  %v6377_v33 = vld [vmem:[#allocation23_spill] sm:$0xff] }
  0xec   :  { %2980 = vmatpush1.bf16.msra.mxu0 %v4983_v10  ;;  %v6370_v10 = vand.u32 4294901760, %v6366_v36  ;;  %v6380_v36 = vld [vmem:[#allocation36_spill] sm:$0xff] }
  0xed   :  { %2982 = vmatprep.subr.bf16.mxu0 %v4988_v19  ;;  %v6371_v19 = vld [vmem:[#allocation17_spill] sm:$0xff] }
  0xf0   :  { %2984 = vmatpush1.bf16.msra.mxu0 %v4992_v48  ;;  %v6372_v48 = vld [vmem:[#allocation18_spill] sm:$0xff] }
  0xf1   :  { %2986 = vmatprep.subr.bf16.mxu0 %v4996_v60  ;;  %v6373_v60 = vld [vmem:[#allocation19_spill] sm:$0xff] }
  0xf4   :  { %2988 = vmatpush1.bf16.msra.mxu0 %v5000_v53  ;;  %v6374_v53 = vld [vmem:[#allocation20_spill] sm:$0xff] }
  0xf5   :  { %2990 = vmatprep.subr.bf16.mxu0 %v5006_v25  ;;  %v6375_v25 = vld [vmem:[#allocation21_spill] sm:$0xff] }
  0xf8   :  { %2992 = vmatpush1.bf16.msra.mxu0 %v5010_v27  ;;  %v6376_v27 = vld [vmem:[#allocation22_spill] sm:$0xff] }
  0xf9   :  { %2994 = vmatprep.subr.bf16.mxu0 %v6367_v50 }
  0xfb   :  { %853 = vmatmul.mubr.f32.vlgmr.msra.gmra.mrb[0].mxu0 %v6368_v20  ;;  %v6413_v20 = vand.u32 4294901760, %v4298_v40  ;;  %v6422_v40 = vld [vmem:[#allocation89_spill] sm:$0xff] }
  0xfc   :  { %2996 = vmatpush1.bf16.msra.mxu0 %v6369_v34  ;;  %990 = vmatprep.mubr.f32.mxu0 %v6370_v10  ;;  %v6381_v10 = vld [vmem:[#allocation41_spill] sm:$0xff] }
  0xfd   :  { %2998 = vmatprep.subr.bf16.mxu0 %v6371_v19 }
 0x100   :  { %3000 = vmatpush1.bf16.msra.mxu0 %v6372_v48 }
 0x101   :  { %3002 = vmatprep.subr.bf16.mxu0 %v6373_v60 }
 0x104   :  { %3004 = vmatpush1.bf16.msra.mxu0 %v6374_v53 }
 0x105   :  { %3006 = vmatprep.subr.bf16.mxu0 %v6375_v25 }
 0x108   :  { %3008 = vmatpush1.bf16.msra.mxu0 %v6376_v27 }
 0x109   :  { %3010 = vmatprep.subr.bf16.mxu0 %v6377_v33 }
 0x10c   :  { %3012 = vmatpush1.bf16.msra.mxu0 %v6378_v16 }
 0x10d   :  { %3014 = vmatprep.subr.bf16.mxu0 %v6379_v45 }
 0x110   :  { %3016 = vmatpush1.bf16.msra.mxu0 %v6380_v36 }
 0x111   :  { %3018 = vmatprep.subr.bf16.mxu0 %v6381_v10 }
 0x114   :  { %3020 = vmatpush1.bf16.msra.mxu0 %v6382_v35 }
 0x115   :  { %3022 = vmatprep.subr.bf16.mxu0 %v6383_v26 }
 0x118   :  { %3024 = vmatpush1.bf16.msra.mxu0 %v6384_v39 }
 0x119   :  { %3026 = vmatprep.subr.bf16.mxu0 %v6385_v46 }
 0x11c   :  { %3028 = vmatpush1.bf16.msra.mxu0 %v6386_v3 }
 0x11d   :  { %3030 = vmatprep.subr.bf16.mxu0 %v6387_v52 }
 0x120   :  { %3032 = vmatpush1.bf16.msra.mxu0 %v6388_v7 }
 0x121   :  { %3034 = vmatprep.subr.bf16.mxu0 %v6389_v41 }
 0x124   :  { %3036 = vmatpush1.bf16.msra.mxu0 %v6390_v63 }
 0x125   :  { %3038 = vmatprep.subr.bf16.mxu0 %v6391_v55 }
 0x128   :  { %3040 = vmatpush1.bf16.msra.mxu0 %v6392_v59 }
 0x129   :  { %3042 = vmatprep.subr.bf16.mxu0 %v6393_v13 }
 0x12c   :  { %3044 = vmatpush1.bf16.msra.mxu0 %v6394_v17 }
 0x12d   :  { %3046 = vmatprep.subr.bf16.mxu0 %v6395_v28 }
 0x130   :  { %3048 = vmatpush1.bf16.msra.mxu0 %v6396_v57 }
 0x131   :  { %3050 = vmatprep.subr.bf16.mxu0 %v6397_v22 }
 0x134   :  { %3052 = vmatpush1.bf16.msra.mxu0 %v6398_v15  ;;  %v6405_v15 = vand.u32 4294901760, %v6359_v62 }
 0x135   :  { %3054 = vmatprep.subr.bf16.mxu0 %v6399_v0  ;;  %v6406_v0 = vand.u32 4294901760, %v6360_v38  ;;  %v6415_v38 = vand.u32 4294901760, %v4310_v8 }
 0x137   :  { %v5180_v22 = vpack.c.bf16 %v6406_v0, %v6405_v15  ;;  %v6414_v0 = vand.u32 4294901760, %v4305_v14  ;;  %v6416_v15 = vand.u32 4294901760, %v4315_v32  ;;  %v6423_v14 = vand.u32 4294901760, %v6422_v40  ;;  %v6427_v32 = vld [vmem:[#allocation91_spill] sm:$0xff] }
 0x138   :  { %3056 = vmatpush1.bf16.msra.mxu0 %v6402_v54  ;;  %v6428_v8 = vand.u32 4294901760, %v6427_v32  ;;  %v6437_v40 = vld [vmem:[#allocation99_spill] sm:$0xff]  ;;  %v6442_v32 = vld [vmem:[#allocation101_spill] sm:$0xff] }
 0x139   :  { %3058 = vmatprep.subr.bf16.mxu0 %v5166_v11  ;;  %v5204_v62 = vpack.c.bf16 %v6414_v0, %v6413_v20  ;;  %v5211_v18 = vpack.c.bf16 %v6416_v15, %v6415_v38  ;;  %v5225_v5 = vpack.c.bf16 %v6425_v23, %v6423_v14  ;;  %v6429_v20 = vld [vmem:[#allocation95_spill] sm:$0xff]  ;;  %v6432_v15 = vld [vmem:[#allocation97_spill] sm:$0xff]  ;;  %v6438_v14 = vand.u32 4294901760, %v6437_v40  ;;  %v6452_v40 = vld [vmem:[#allocation26_spill] sm:$0xff] }
 0x13a   :  { %v6430_v0 = vand.u32 4294901760, %v6429_v20  ;;  %v6433_v1 = vand.u32 4294901760, %v6432_v15  ;;  %v6440_v23 = vand.u32 4294901760, %v6439_v58  ;;  %v6444_v20 = vld [vmem:[#allocation102_spill] sm:$0xff]  ;;  %v6447_v15 = vld [vmem:[#allocation105_spill] sm:$0xff]  ;;  %v6454_v58 = vld [vmem:[#allocation27_spill] sm:$0xff] }
 0x13b   :  { %994 = vmatmul.mubr.f32.vlgmr.msra.gmra.mrb[0].mxu0 %v6407_v61  ;;  %v6420_v61 = vand.u32 4294901760, %v6419_v4  ;;  %6426 = vst [vmem:[#allocation81_spill] sm:$0xff] %v5225_v5 }
 0x13c   :  { %3060 = vmatpush1.bf16.msra.mxu0 %v5173_v51  ;;  %1257 = vmatprep.mubr.f32.mxu0 %v6410_v21  ;;  %v5232_v38 = vpack.c.bf16 %v6430_v0, %v6428_v8  ;;  %v6443_v8 = vand.u32 4294901760, %v6442_v32  ;;  %v6445_v0 = vand.u32 4294901760, %v6444_v20  ;;  %v6457_v32 = vld [vmem:[#allocation28_spill] sm:$0xff]  ;;  %v6459_v20 = vld [vmem:[#allocation30_spill] sm:$0xff] }
 0x13d   :  { %3062 = vmatprep.subr.bf16.mxu0 %v5180_v22  ;;  %v5218_v56 = vpack.c.bf16 %v6420_v61, %v6418_v6  ;;  %v6434_v6 = vld [vmem:[#allocation98_spill] sm:$0xff] }
 0x13e   :  { %6431 = vst [vmem:[#allocation69_spill] sm:$0xff] %v5232_v38  ;;  %v6435_v4 = vand.u32 4294901760, %v6434_v6  ;;  %v6449_v6 = vld [vmem:[#allocation24_spill] sm:$0xff] }
 0x13f   :  { %6421 = vst [vmem:[#allocation80_spill] sm:$0xff] %v5218_v56 }
 0x140   :  { %3064 = vmatpush1.bf16.msra.mxu0 %v5189_v49  ;;  %v5239_v61 = vpack.c.bf16 %v6435_v4, %v6433_v1  ;;  %v6448_v1 = vand.u32 4294901760, %v6447_v15  ;;  %v6450_v4 = vand.u32 4294901760, %v6449_v6  ;;  %v6462_v15 = vld [vmem:[#allocation31_spill] sm:$0xff]  ;;  %v6464_v6 = vld [vmem:[#allocation32_spill] sm:$0xff] }
 0x141   :  { %3066 = vmatprep.subr.bf16.mxu0 %v5197_v24 }
 0x142   :  { %6436 = vst [vmem:[#allocation82_spill] sm:$0xff] %v5239_v61 }
 0x144   :  { %3068 = vmatpush1.bf16.msra.mxu0 %v5204_v62 }
 0x145   :  { %3070 = vmatprep.subr.bf16.mxu0 %v5211_v18 }
 0x148   :  { %3072 = vmatpush1.bf16.msra.mxu0 %v5218_v56  ;;  %v5246_v56 = vpack.c.bf16 %v6440_v23, %v6438_v14  ;;  %v6453_v14 = vand.u32 4294901760, %v6452_v40  ;;  %v6455_v23 = vand.u32 4294901760, %v6454_v58  ;;  %v6467_v40 = vld [vmem:[#allocation33_spill] sm:$0xff]  ;;  %v6469_v58 = vld [vmem:[#allocation34_spill] sm:$0xff] }
 0x149   :  { %3074 = vmatprep.subr.bf16.mxu0 %v5225_v5  ;;  %v5253_v5 = vpack.c.bf16 %v6445_v0, %v6443_v8  ;;  %v6458_v8 = vand.u32 4294901760, %v6457_v32  ;;  %v6460_v0 = vand.u32 4294901760, %v6459_v20  ;;  %v6472_v32 = vld [vmem:[#allocation37_spill] sm:$0xff]  ;;  %v6474_v20 = vld [vmem:[#allocation38_spill] sm:$0xff] }
 0x14a   :  { %6441 = vst [vmem:[#allocation83_spill] sm:$0xff] %v5246_v56 }
 0x14b   :  { %6446 = vst [vmem:[#allocation62_spill] sm:$0xff] %v5253_v5 }
 0x14c   :  { %3076 = vmatpush1.bf16.msra.mxu0 %v5232_v38  ;;  %v5260_v38 = vpack.c.bf16 %v6450_v4, %v6448_v1  ;;  %v6463_v1 = vand.u32 4294901760, %v6462_v15  ;;  %v6465_v4 = vand.u32 4294901760, %v6464_v6  ;;  %v6477_v15 = vld [vmem:[#allocation39_spill] sm:$0xff]  ;;  %v6479_v6 = vld [vmem:[#allocation40_spill] sm:$0xff] }
 0x14d   :  { %3078 = vmatprep.subr.bf16.mxu0 %v5239_v61  ;;  %v5267_v61 = vpack.c.bf16 %v6455_v23, %v6453_v14  ;;  %v6468_v14 = vand.u32 4294901760, %v6467_v40  ;;  %v6470_v23 = vand.u32 4294901760, %v6469_v58  ;;  %v6482_v40 = vld [vmem:[#allocation113_spill] sm:$0xff]  ;;  %v6484_v58 = vld [vmem:[#allocation42_spill] sm:$0xff] }
 0x14e   :  { %6451 = vst [vmem:[#allocation15_spill] sm:$0xff] %v5260_v38 }
 0x14f   :  { %6456 = vst [vmem:[#allocation79_spill] sm:$0xff] %v5267_v61 }
 0x150   :  { %3080 = vmatpush1.bf16.msra.mxu0 %v5246_v56  ;;  %v5274_v56 = vpack.c.bf16 %v6460_v0, %v6458_v8  ;;  %v6473_v8 = vand.u32 4294901760, %v6472_v32  ;;  %v6475_v0 = vand.u32 4294901760, %v6474_v20  ;;  %v6487_v32 = vld [vmem:[#allocation115_spill] sm:$0xff] }
 0x151   :  { %3082 = vmatprep.subr.bf16.mxu0 %v5253_v5  ;;  %v5281_v5 = vpack.c.bf16 %v6465_v4, %v6463_v1  ;;  %v6478_v1 = vand.u32 4294901760, %v6477_v15  ;;  %v6480_v4 = vand.u32 4294901760, %v6479_v6  ;;  %v6489_v20 = vld [vmem:[#allocation43_spill] sm:$0xff]  ;;  %v6492_v15 = vld [vmem:[#allocation46_spill] sm:$0xff] }
 0x152   :  { %6461 = vst [vmem:[#allocation16_spill] sm:$0xff] %v5274_v56  ;;  %v6494_v6 = vld [vmem:[#allocation47_spill] sm:$0xff] }
 0x153   :  { %6466 = vst [vmem:[#allocation17_spill] sm:$0xff] %v5281_v5 }
 0x154   :  { %3084 = vmatpush1.bf16.msra.mxu0 %v5260_v38  ;;  %v5288_v38 = vpack.c.bf16 %v6470_v23, %v6468_v14  ;;  %v6483_v14 = vand.u32 4294901760, %v6482_v40  ;;  %v6485_v23 = vand.u32 4294901760, %v6484_v58  ;;  %v6497_v40 = vld [vmem:[#allocation48_spill] sm:$0xff]  ;;  %v6499_v58 = vld [vmem:[#allocation51_spill] sm:$0xff] }
 0x155   :  { %3086 = vmatprep.subr.bf16.mxu0 %v5267_v61  ;;  %v5295_v61 = vpack.c.bf16 %v6475_v0, %v6473_v8  ;;  %v6488_v8 = vand.u32 4294901760, %v6487_v32  ;;  %v6490_v0 = vand.u32 4294901760, %v6489_v20  ;;  %v6501_v32 = vld [vmem:[#allocation52_spill] sm:$0xff]  ;;  %v6503_v20 = vld [vmem:[#allocation53_spill] sm:$0xff] }
 0x156   :  { %6471 = vst [vmem:[#allocation18_spill] sm:$0xff] %v5288_v38 }
 0x157   :  { %6476 = vst [vmem:[#allocation19_spill] sm:$0xff] %v5295_v61 }
 0x158   :  { %3088 = vmatpush1.bf16.msra.mxu0 %v5274_v56  ;;  %v5302_v56 = vpack.c.bf16 %v6480_v4, %v6478_v1  ;;  %v6493_v1 = vand.u32 4294901760, %v6492_v15  ;;  %v6495_v4 = vand.u32 4294901760, %v6494_v6  ;;  %v6505_v15 = vld [vmem:[#allocation119_spill] sm:$0xff] }
 0x159   :  { %3090 = vmatprep.subr.bf16.mxu0 %v5281_v5  ;;  %v5309_v5 = vpack.c.bf16 %v6485_v23, %v6483_v14  ;;  %v6498_v14 = vand.u32 4294901760, %v6497_v40  ;;  %v6500_v23 = vand.u32 4294901760, %v6499_v58  ;;  %v6507_v6 = vld [vmem:[#allocation55_spill] sm:$0xff]  ;;  %v6509_v40 = vld [vmem:[#allocation56_spill] sm:$0xff]  ;;  %v6511_v58 = vld [vmem:[#allocation121_spill] sm:$0xff] }
 0x15a   :  { %6481 = vst [vmem:[#allocation20_spill] sm:$0xff] %v5302_v56 }
 0x15b   :  { %6486 = vst [vmem:[#allocation21_spill] sm:$0xff] %v5309_v5 }
 0x15c   :  { %3092 = vmatpush1.bf16.msra.mxu0 %v5288_v38  ;;  %v5316_v38 = vpack.c.bf16 %v6490_v0, %v6488_v8  ;;  %v6502_v8 = vand.u32 4294901760, %v6501_v32  ;;  %v6504_v0 = vand.u32 4294901760, %v6503_v20  ;;  %v6513_v32 = vand.u32 4294901760, %v4809_v31 }
 0x15d   :  { %3094 = vmatprep.subr.bf16.mxu0 %v5295_v61  ;;  %v5323_v61 = vpack.c.bf16 %v6495_v4, %v6493_v1  ;;  %v6506_v1 = vand.u32 4294901760, %v6505_v15  ;;  %v6508_v4 = vand.u32 4294901760, %v6507_v6  ;;  %v6516_v15 = vand.u32 4294901760, %v4833_v29 }
 0x15e   :  { %6491 = vst [vmem:[#allocation22_spill] sm:$0xff] %v5316_v38  ;;  %v6517_v6 = vand.u32 4294901760, %v4866_v37  ;;  %v6519_v31 = vand.u32 4294901760, %v4885_v9  ;;  %v6522_v29 = vand.u32 4294901760, %v4954_v43  ;;  %v6523_v43 = vld [vmem:[#allocation74_spill] sm:$0xff]  ;;  %v6525_v37 = vld [vmem:[#allocation85_spill] sm:$0xff] }
 0x15f   :  { %6496 = vst [vmem:[#allocation23_spill] sm:$0xff] %v5323_v61 }
 0x160   :  { %3096 = vmatpush1.bf16.msra.mxu0 %v5302_v56  ;;  %v5330_v56 = vpack.c.bf16 %v6500_v23, %v6498_v14  ;;  %v6510_v14 = vand.u32 4294901760, %v6509_v40  ;;  %v6512_v23 = vand.u32 4294901760, %v6511_v58 }
 0x161   :  { %3098 = vmatprep.subr.bf16.mxu0 %v5309_v5  ;;  %v5337_v5 = vpack.c.bf16 %v6504_v0, %v6502_v8  ;;  %v6514_v8 = vand.u32 4294901760, %v4818_v12  ;;  %v6515_v0 = vand.u32 4294901760, %v4823_v30  ;;  %v6520_v12 = vand.u32 4294901760, %v4890_v42 }
 0x162   :  { %v6521_v30 = vand.u32 4294901760, %v4921_v2  ;;  %v6524_v2 = vld [vmem:[#allocation84_spill] sm:$0xff] }
 0x163   :  { %v5358_v20 = vpack.c.bf16 %v6514_v8, %v6513_v32  ;;  %v3605_v32 = vld [vmem:[#allocation2] sm:$0xf] }
 0x164   :  { %3100 = vmatpush1.bf16.msra.mxu0 %v5316_v38  ;;  %v5344_v38 = vpack.c.bf16 %v6508_v4, %v6506_v1  ;;  %v5365_v1 = vpack.c.bf16 %v6516_v15, %v6515_v0  ;;  %v6518_v4 = vand.u32 4294901760, %v4872_v47  ;;  %v5386_v58 = vpack.c.bf16 %v6522_v29, %v6521_v30 }
 0x165   :  { %3102 = vmatprep.subr.bf16.mxu0 %v5323_v61  ;;  %v5351_v61 = vpack.c.bf16 %v6512_v23, %v6510_v14  ;;  %v5379_v14 = vpack.c.bf16 %v6520_v12, %v6519_v31 }
 0x166   :  { %v5372_v40 = vpack.c.bf16 %v6518_v4, %v6517_v6 }
 0x168   :  { %3104 = vmatpush1.bf16.msra.mxu0 %v5330_v56 }
 0x169   :  { %3106 = vmatprep.subr.bf16.mxu0 %v5337_v5 }
 0x16c   :  { %3108 = vmatpush1.bf16.msra.mxu0 %v5344_v38 }
 0x16d   :  { %3110 = vmatprep.subr.bf16.mxu0 %v5351_v61 }
 0x170   :  { %3112 = vmatpush1.bf16.msra.mxu0 %v5358_v20 }
 0x171   :  { %3114 = vmatprep.subr.bf16.mxu0 %v5365_v1 }
 0x174   :  { %3116 = vmatpush1.bf16.msra.mxu0 %v5372_v40 }
 0x175   :  { %3118 = vmatprep.subr.bf16.mxu0 %v5379_v14 }
 0x178   :  { %3120 = vmatpush1.bf16.msra.mxu0 %v5386_v58 }
 0x179   :  { %3122 = vmatprep.subr.bf16.mxu0 %v6367_v50 }
 0x17b   :  { %1259 = vmatmul.mubr.f32.vlgmr.msra.gmra.mrb[0].mxu0 %v6362_v44 }
 0x17c   :  { %3124 = vmatpush1.bf16.msra.mxu0 %v6369_v34  ;;  %1394 = vmatprep.mubr.f32.mxu0 %v6410_v21  ;;  %v6526_v21 = vld [vmem:[#allocation35_spill] sm:$0xff] }
 0x17d   :  { %3126 = vmatprep.subr.bf16.mxu0 %v6371_v19 }
 0x180   :  { %3128 = vmatpush1.bf16.msra.mxu0 %v6372_v48 }
 0x181   :  { %3130 = vmatprep.subr.bf16.mxu0 %v6373_v60 }
 0x184   :  { %3132 = vmatpush1.bf16.msra.mxu0 %v6374_v53 }
 0x185   :  { %3134 = vmatprep.subr.bf16.mxu0 %v6375_v25 }
 0x188   :  { %3136 = vmatpush1.bf16.msra.mxu0 %v6376_v27 }
 0x189   :  { %3138 = vmatprep.subr.bf16.mxu0 %v6377_v33 }
 0x18c   :  { %3140 = vmatpush1.bf16.msra.mxu0 %v6378_v16 }
 0x18d   :  { %3142 = vmatprep.subr.bf16.mxu0 %v6379_v45 }
 0x190   :  { %3144 = vmatpush1.bf16.msra.mxu0 %v6380_v36 }
 0x191   :  { %3146 = vmatprep.subr.bf16.mxu0 %v6381_v10 }
 0x194   :  { %3148 = vmatpush1.bf16.msra.mxu0 %v6382_v35 }
 0x195   :  { %3150 = vmatprep.subr.bf16.mxu0 %v6383_v26 }
 0x198   :  { %3152 = vmatpush1.bf16.msra.mxu0 %v6384_v39 }
 0x199   :  { %3154 = vmatprep.subr.bf16.mxu0 %v6385_v46 }
 0x19c   :  { %3156 = vmatpush1.bf16.msra.mxu0 %v6386_v3 }
 0x19d   :  { %3158 = vmatprep.subr.bf16.mxu0 %v6387_v52 }
 0x1a0   :  { %3160 = vmatpush1.bf16.msra.mxu0 %v6388_v7 }
 0x1a1   :  { %3162 = vmatprep.subr.bf16.mxu0 %v6389_v41 }
 0x1a4   :  { %3164 = vmatpush1.bf16.msra.mxu0 %v6390_v63 }
 0x1a5   :  { %3166 = vmatprep.subr.bf16.mxu0 %v6391_v55 }
 0x1a8   :  { %3168 = vmatpush1.bf16.msra.mxu0 %v6392_v59 }
 0x1a9   :  { %3170 = vmatprep.subr.bf16.mxu0 %v6393_v13 }
 0x1ac   :  { %3172 = vmatpush1.bf16.msra.mxu0 %v6394_v17 }
 0x1ad   :  { %3174 = vmatprep.subr.bf16.mxu0 %v6395_v28 }
 0x1b0   :  { %3176 = vmatpush1.bf16.msra.mxu0 %v6396_v57 }
 0x1b1   :  { %3178 = vmatprep.subr.bf16.mxu0 %v6523_v43 }
 0x1b4   :  { %3180 = vmatpush1.bf16.msra.mxu0 %v6524_v2 }
 0x1b5   :  { %3182 = vmatprep.subr.bf16.mxu0 %v6525_v37 }
 0x1b8   :  { %3184 = vmatpush1.bf16.msra.mxu0 %v6402_v54 }
 0x1bb   :  { %1396 = vmatmul.mubr.f32.vlgmr.msra.gmra.mrb[0].mxu0 %v6362_v44 }
 0x28e   :  { %v1397_v42 = vpop.f32.mrb[0].mxu0 }
 0x28f   :  { %v1399_v47 = vpop.f32.mrb[1].mxu0 }
 0x290   :  { %v1404_v9 = vcombine.low %v1397_v42, %v1399_v47 }
 0x292   :  { %v1411_v23 = vrot.slane %v1404_v9, %v6526_v21  ;;  %2800 = vst.sshfl [vmem:[#allocation10] sm:$0x33 pattern:$0x76325410] %v1404_v9 }
 0x294   :  { %v5426_v8 = vsub.f32 %v3605_v32, %v1411_v23  ;;  %v6528_v32 = vld [vmem:[#allocation92_spill] sm:$0xff] }
 0x296   :  { %6527 = vst [vmem:[#allocation25_spill] sm:$0xff] %v5426_v8  ;;  %v1414_v0 = vmul.f32 %v5426_v8, %v5426_v8  ;;  %v6532_v8 = vld [vmem:[#allocation103_spill] sm:$0xff] }
 0x298   :  { %v1422_v15 = vrot.slane %v1414_v0, %v6526_v21  ;;  %v6529_v0 = vld [vmem:[#allocation93_spill] sm:$0xff]  ;;  %v6534_v21 = vld [vmem:[#allocation106_spill] sm:$0xff] }
 0x29a   :  { %v5431_v6 = vand.u32 4294901760, %v1422_v15  ;;  %v1423_v4 = vcombine.high %v1422_v15, %v1422_v15 }
 0x29c   :  { %v5433_v31 = vand.u32 4294901760, %v1423_v4  ;;  %v5436_v44 = vsub.f32 %v1422_v15, %v5431_v6  ;;  %v6530_v15 = vld [vmem:[#allocation94_spill] sm:$0xff] }
 0x29e   :  { %v5439_v12 = vsub.f32 %v1423_v4, %v5433_v31  ;;  %v5970_v30 = vand.u32 4294901760, %v5436_v44  ;;  %v6531_v4 = vld [vmem:[#allocation96_spill] sm:$0xff] }
 0x2a0   :  { %v1556_v29 = vand.u32 4294901760, %v5439_v12  ;;  %v1563_v42 = vsub.f32 %v5436_v44, %v5970_v30  ;;  %v6533_v30 = vld [vmem:[#allocation104_spill] sm:$0xff] }
 0x2a2   :  { %v1557_v47 = vsub.f32 %v5439_v12, %v1556_v29  ;;  %v1564_v23 = vand.u32 4294901760, %v1563_v42  ;;  %v6536_v42 = vld [vmem:[#allocation108_spill] sm:$0xff] }
 0x2a4   :  { %v1558_v9 = vand.u32 4294901760, %v1557_v47  ;;  %v6535_v47 = vld [vmem:[#allocation107_spill] sm:$0xff] }
 0x2a6   :  { %1559 = vmatprep.mubr.f32.mxu1 %v1558_v9  ;;  %v6537_v9 = vld [vmem:[#allocation109_spill] sm:$0xff] }
 0x2a7   :  { %1565 = vmatmul.mubr.f32.vlgmr.msra.gmra.mrb[0].mxu1 %v1564_v23  ;;  %v6538_v23 = vld [vmem:[#allocation110_spill] sm:$0xff] }
 0x2a8   :  { %3252 = vmatpush1.bf16.msra.mxu1 %v6528_v32  ;;  %1956 = vmatprep.mubr.f32.mxu1 %v5433_v31  ;;  %v6539_v32 = vld [vmem:[#allocation111_spill] sm:$0xff] }
 0x2a9   :  { %3254 = vmatprep.subr.bf16.mxu1 %v6529_v0  ;;  %v6540_v0 = vld [vmem:[#allocation112_spill] sm:$0xff] }
 0x2ac   :  { %3256 = vmatpush1.bf16.msra.mxu1 %v6530_v15  ;;  %v6541_v15 = vld [vmem:[#allocation114_spill] sm:$0xff] }
 0x2ad   :  { %3258 = vmatprep.subr.bf16.mxu1 %v6531_v4  ;;  %v6542_v4 = vld [vmem:[#allocation116_spill] sm:$0xff] }
 0x2b0   :  { %3260 = vmatpush1.bf16.msra.mxu1 %v6532_v8  ;;  %v6543_v8 = vld [vmem:[#allocation117_spill] sm:$0xff] }
 0x2b1   :  { %3262 = vmatprep.subr.bf16.mxu1 %v6533_v30  ;;  %v6544_v30 = vld [vmem:[#allocation118_spill] sm:$0xff] }
 0x2b4   :  { %3264 = vmatpush1.bf16.msra.mxu1 %v6534_v21  ;;  %v6545_v21 = vld [vmem:[#allocation120_spill] sm:$0xff] }
 0x2b5   :  { %3266 = vmatprep.subr.bf16.mxu1 %v6535_v47  ;;  %v6546_v47 = vld [vmem:[#allocation58_spill] sm:$0xff] }
 0x2b8   :  { %3268 = vmatpush1.bf16.msra.mxu1 %v6536_v42  ;;  %v6547_v42 = vld [vmem:[#allocation59_spill] sm:$0xff] }
 0x2b9   :  { %3270 = vmatprep.subr.bf16.mxu1 %v6537_v9  ;;  %v6548_v9 = vld [vmem:[#allocation122_spill] sm:$0xff] }
 0x2bc   :  { %3272 = vmatpush1.bf16.msra.mxu1 %v6538_v23  ;;  %v6549_v23 = vld [vmem:[#allocation123_spill] sm:$0xff] }
 0x2bd   :  { %3274 = vmatprep.subr.bf16.mxu1 %v6539_v32  ;;  %v6550_v32 = vld [vmem:[#allocation150_spill] sm:$0xff] }
 0x2c0   :  { %3276 = vmatpush1.bf16.msra.mxu1 %v6540_v0  ;;  %v6551_v0 = vld [vmem:[#allocation151_spill] sm:$0xff] }
 0x2c1   :  { %3278 = vmatprep.subr.bf16.mxu1 %v6541_v15  ;;  %v6552_v15 = vld [vmem:[#allocation152_spill] sm:$0xff] }
 0x2c4   :  { %3280 = vmatpush1.bf16.msra.mxu1 %v6542_v4  ;;  %v6553_v4 = vld [vmem:[#allocation153_spill] sm:$0xff] }
 0x2c5   :  { %3282 = vmatprep.subr.bf16.mxu1 %v6543_v8  ;;  %v6554_v8 = vld [vmem:[#allocation154_spill] sm:$0xff] }
 0x2c8   :  { %3284 = vmatpush1.bf16.msra.mxu1 %v6544_v30  ;;  %v6555_v30 = vld [vmem:[#allocation155_spill] sm:$0xff] }
 0x2c9   :  { %3286 = vmatprep.subr.bf16.mxu1 %v6545_v21  ;;  %v6556_v21 = vld [vmem:[#allocation156_spill] sm:$0xff] }
 0x2cc   :  { %3288 = vmatpush1.bf16.msra.mxu1 %v6546_v47  ;;  %v6557_v47 = vld [vmem:[#allocation157_spill] sm:$0xff] }
 0x2cd   :  { %3290 = vmatprep.subr.bf16.mxu1 %v6547_v42  ;;  %v6558_v42 = vld [vmem:[#allocation158_spill] sm:$0xff] }
 0x2d0   :  { %3292 = vmatpush1.bf16.msra.mxu1 %v6548_v9  ;;  %v6559_v9 = vld [vmem:[#allocation67_spill] sm:$0xff] }
 0x2d1   :  { %3294 = vmatprep.subr.bf16.mxu1 %v6549_v23  ;;  %v6560_v23 = vld [vmem:[#allocation70_spill] sm:$0xff] }
 0x2d4   :  { %3296 = vmatpush1.bf16.msra.mxu1 %v6550_v32  ;;  %v6561_v32 = vld [vmem:[#allocation77_spill] sm:$0xff] }
 0x2d5   :  { %3298 = vmatprep.subr.bf16.mxu1 %v6551_v0  ;;  %v6562_v0 = vld [vmem:[#allocation78_spill] sm:$0xff] }
 0x2d8   :  { %3300 = vmatpush1.bf16.msra.mxu1 %v6552_v15  ;;  %v6563_v15 = vld [vmem:[#allocation124_spill] sm:$0xff] }
 0x2d9   :  { %3302 = vmatprep.subr.bf16.mxu1 %v6553_v4  ;;  %v6564_v4 = vld [vmem:[#allocation125_spill] sm:$0xff] }
 0x2dc   :  { %3304 = vmatpush1.bf16.msra.mxu1 %v6554_v8  ;;  %v6565_v8 = vld [vmem:[#allocation126_spill] sm:$0xff] }
 0x2dd   :  { %3306 = vmatprep.subr.bf16.mxu1 %v6555_v30  ;;  %v6566_v30 = vld [vmem:[#allocation127_spill] sm:$0xff] }
 0x2e0   :  { %3308 = vmatpush1.bf16.msra.mxu1 %v6556_v21  ;;  %v6567_v21 = vld [vmem:[#allocation128_spill] sm:$0xff] }
 0x2e1   :  { %3310 = vmatprep.subr.bf16.mxu1 %v6557_v47  ;;  %v6568_v47 = vld [vmem:[#allocation129_spill] sm:$0xff] }
 0x2e4   :  { %3312 = vmatpush1.bf16.msra.mxu1 %v6558_v42  ;;  %v6569_v42 = vld [vmem:[#allocation130_spill] sm:$0xff] }
 0x2e5   :  { %3314 = vmatprep.subr.bf16.mxu1 %v6559_v9  ;;  %v6570_v9 = vld [vmem:[#allocation131_spill] sm:$0xff] }
 0x2e7   :  { %1958 = vmatmul.mubr.f32.vlgmr.msra.gmra.mrb[0].mxu1 %v5431_v6 }
 0x2e8   :  { %3316 = vmatpush1.bf16.msra.mxu1 %v6560_v23  ;;  %2158 = vmatprep.mubr.f32.mxu1 %v5439_v12  ;;  %v6571_v23 = vld [vmem:[#allocation75_spill] sm:$0xff]  ;;  %v6591_v12 = vand.u32 4294901760, %v5436_v44 }
 0x2e9   :  { %3318 = vmatprep.subr.bf16.mxu1 %v6561_v32  ;;  %v6572_v32 = vld [vmem:[#allocation132_spill] sm:$0xff] }
 0x2ec   :  { %3320 = vmatpush1.bf16.msra.mxu1 %v6562_v0  ;;  %v6573_v0 = vld [vmem:[#allocation133_spill] sm:$0xff] }
 0x2ed   :  { %3322 = vmatprep.subr.bf16.mxu1 %v6563_v15  ;;  %v6574_v15 = vld [vmem:[#allocation134_spill] sm:$0xff] }
 0x2f0   :  { %3324 = vmatpush1.bf16.msra.mxu1 %v6564_v4  ;;  %v6575_v4 = vld [vmem:[#allocation135_spill] sm:$0xff] }
 0x2f1   :  { %3326 = vmatprep.subr.bf16.mxu1 %v6565_v8  ;;  %v6576_v8 = vld [vmem:[#allocation136_spill] sm:$0xff] }
 0x2f4   :  { %3328 = vmatpush1.bf16.msra.mxu1 %v6566_v30  ;;  %v6577_v30 = vld [vmem:[#allocation137_spill] sm:$0xff] }
 0x2f5   :  { %3330 = vmatprep.subr.bf16.mxu1 %v6567_v21  ;;  %v6578_v21 = vld [vmem:[#allocation76_spill] sm:$0xff] }
 0x2f8   :  { %3332 = vmatpush1.bf16.msra.mxu1 %v6568_v47  ;;  %v6579_v47 = vld [vmem:[#allocation138_spill] sm:$0xff] }
 0x2f9   :  { %3334 = vmatprep.subr.bf16.mxu1 %v6569_v42  ;;  %v6580_v42 = vld [vmem:[#allocation139_spill] sm:$0xff] }
 0x2fc   :  { %3336 = vmatpush1.bf16.msra.mxu1 %v6570_v9  ;;  %v6581_v9 = vld [vmem:[#allocation140_spill] sm:$0xff] }
 0x2fd   :  { %3338 = vmatprep.subr.bf16.mxu1 %v6571_v23  ;;  %v6582_v23 = vld [vmem:[#allocation141_spill] sm:$0xff] }
 0x300   :  { %3340 = vmatpush1.bf16.msra.mxu1 %v6572_v32  ;;  %v6583_v32 = vld [vmem:[#allocation142_spill] sm:$0xff] }
 0x301   :  { %3342 = vmatprep.subr.bf16.mxu1 %v6573_v0  ;;  %v6584_v0 = vld [vmem:[#allocation143_spill] sm:$0xff] }
 0x304   :  { %3344 = vmatpush1.bf16.msra.mxu1 %v6574_v15  ;;  %v6585_v15 = vld [vmem:[#allocation144_spill] sm:$0xff] }
 0x305   :  { %3346 = vmatprep.subr.bf16.mxu1 %v6575_v4  ;;  %v6586_v4 = vld [vmem:[#allocation145_spill] sm:$0xff] }
 0x308   :  { %3348 = vmatpush1.bf16.msra.mxu1 %v6576_v8  ;;  %v6587_v8 = vld [vmem:[#allocation146_spill] sm:$0xff] }
 0x309   :  { %3350 = vmatprep.subr.bf16.mxu1 %v6577_v30  ;;  %v6588_v30 = vld [vmem:[#allocation147_spill] sm:$0xff] }
 0x30c   :  { %3352 = vmatpush1.bf16.msra.mxu1 %v6578_v21  ;;  %v6589_v21 = vld [vmem:[#allocation148_spill] sm:$0xff] }
 0x30d   :  { %3354 = vmatprep.subr.bf16.mxu1 %v6579_v47  ;;  %v6590_v47 = vld [vmem:[#allocation149_spill] sm:$0xff] }
 0x310   :  { %3356 = vmatpush1.bf16.msra.mxu1 %v6580_v42  ;;  %v6595_v42 = vld [vmem:[#allocation82_spill] sm:$0xff] }
 0x311   :  { %3358 = vmatprep.subr.bf16.mxu1 %v6581_v9  ;;  %v6597_v9 = vld [vmem:[#allocation62_spill] sm:$0xff] }
 0x314   :  { %3360 = vmatpush1.bf16.msra.mxu1 %v6582_v23  ;;  %v6603_v23 = vld [vmem:[#allocation19_spill] sm:$0xff] }
 0x315   :  { %3362 = vmatprep.subr.bf16.mxu1 %v6583_v32  ;;  %v6604_v32 = vld [vmem:[#allocation20_spill] sm:$0xff] }
 0x318   :  { %3364 = vmatpush1.bf16.msra.mxu1 %v6584_v0  ;;  %v6605_v0 = vld [vmem:[#allocation21_spill] sm:$0xff] }
 0x319   :  { %3366 = vmatprep.subr.bf16.mxu1 %v6585_v15  ;;  %v6606_v15 = vld [vmem:[#allocation22_spill] sm:$0xff] }
 0x31c   :  { %3368 = vmatpush1.bf16.msra.mxu1 %v6586_v4  ;;  %v6607_v4 = vld [vmem:[#allocation23_spill] sm:$0xff] }
 0x31d   :  { %3370 = vmatprep.subr.bf16.mxu1 %v6587_v8 }
 0x320   :  { %3372 = vmatpush1.bf16.msra.mxu1 %v6588_v30 }
 0x321   :  { %3374 = vmatprep.subr.bf16.mxu1 %v6589_v21 }
 0x324   :  { %3376 = vmatpush1.bf16.msra.mxu1 %v6590_v47 }
 0x325   :  { %3378 = vmatprep.subr.bf16.mxu1 %v6367_v50 }
 0x327   :  { %2161 = vmatmul.mubr.f32.vlgmr.msra.gmra.mrb[0].mxu1 %v5436_v44  ;;  %v6594_v44 = vld [vmem:[#allocation69_spill] sm:$0xff] }
 0x328   :  { %3380 = vmatpush1.bf16.msra.mxu1 %v6369_v34  ;;  %2298 = vmatprep.mubr.f32.mxu1 %v1556_v29  ;;  %v6592_v29 = vld [vmem:[#allocation80_spill] sm:$0xff] }
 0x329   :  { %3382 = vmatprep.subr.bf16.mxu1 %v6371_v19 }
 0x32c   :  { %3384 = vmatpush1.bf16.msra.mxu1 %v6372_v48 }
 0x32d   :  { %3386 = vmatprep.subr.bf16.mxu1 %v6373_v60 }
 0x330   :  { %3388 = vmatpush1.bf16.msra.mxu1 %v6374_v53 }
 0x331   :  { %3390 = vmatprep.subr.bf16.mxu1 %v6375_v25 }
 0x334   :  { %3392 = vmatpush1.bf16.msra.mxu1 %v6376_v27 }
 0x335   :  { %3394 = vmatprep.subr.bf16.mxu1 %v6377_v33 }
 0x338   :  { %3396 = vmatpush1.bf16.msra.mxu1 %v6378_v16 }
 0x339   :  { %3398 = vmatprep.subr.bf16.mxu1 %v6379_v45 }
 0x33c   :  { %3400 = vmatpush1.bf16.msra.mxu1 %v6380_v36 }
 0x33d   :  { %3402 = vmatprep.subr.bf16.mxu1 %v6381_v10 }
 0x340   :  { %3404 = vmatpush1.bf16.msra.mxu1 %v6382_v35 }
 0x341   :  { %3406 = vmatprep.subr.bf16.mxu1 %v6383_v26 }
 0x344   :  { %3408 = vmatpush1.bf16.msra.mxu1 %v6384_v39 }
 0x345   :  { %3410 = vmatprep.subr.bf16.mxu1 %v6385_v46 }
 0x348   :  { %3412 = vmatpush1.bf16.msra.mxu1 %v6386_v3 }
 0x349   :  { %3414 = vmatprep.subr.bf16.mxu1 %v6387_v52 }
 0x34c   :  { %3416 = vmatpush1.bf16.msra.mxu1 %v6388_v7 }
 0x34d   :  { %3418 = vmatprep.subr.bf16.mxu1 %v6389_v41 }
 0x350   :  { %3420 = vmatpush1.bf16.msra.mxu1 %v6390_v63 }
 0x351   :  { %3422 = vmatprep.subr.bf16.mxu1 %v6391_v55 }
 0x354   :  { %3424 = vmatpush1.bf16.msra.mxu1 %v6392_v59 }
 0x355   :  { %3426 = vmatprep.subr.bf16.mxu1 %v6393_v13 }
 0x358   :  { %3428 = vmatpush1.bf16.msra.mxu1 %v6394_v17 }
 0x359   :  { %3430 = vmatprep.subr.bf16.mxu1 %v6395_v28 }
 0x35c   :  { %3432 = vmatpush1.bf16.msra.mxu1 %v6396_v57 }
 0x35d   :  { %3434 = vmatprep.subr.bf16.mxu1 %v6523_v43 }
 0x360   :  { %3436 = vmatpush1.bf16.msra.mxu1 %v6524_v2 }
 0x361   :  { %3438 = vmatprep.subr.bf16.mxu1 %v6525_v37 }
 0x364   :  { %3440 = vmatpush1.bf16.msra.mxu1 %v6402_v54 }
 0x365   :  { %3442 = vmatprep.subr.bf16.mxu1 %v5166_v11  ;;  %v6593_v11 = vld [vmem:[#allocation81_spill] sm:$0xff] }
 0x367   :  { %2302 = vmatmul.mubr.f32.vlgmr.msra.gmra.mrb[0].mxu1 %v6591_v12 }
 0x368   :  { %3444 = vmatpush1.bf16.msra.mxu1 %v5173_v51  ;;  %2565 = vmatprep.mubr.f32.mxu1 %v5433_v31  ;;  %v6596_v51 = vld [vmem:[#allocation83_spill] sm:$0xff] }
 0x369   :  { %3446 = vmatprep.subr.bf16.mxu1 %v5180_v22  ;;  %v6598_v22 = vld [vmem:[#allocation15_spill] sm:$0xff] }
 0x36c   :  { %3448 = vmatpush1.bf16.msra.mxu1 %v5189_v49  ;;  %v6599_v49 = vld [vmem:[#allocation79_spill] sm:$0xff] }
 0x36d   :  { %3450 = vmatprep.subr.bf16.mxu1 %v5197_v24  ;;  %v6600_v24 = vld [vmem:[#allocation16_spill] sm:$0xff] }
 0x370   :  { %3452 = vmatpush1.bf16.msra.mxu1 %v5204_v62  ;;  %v6601_v62 = vld [vmem:[#allocation17_spill] sm:$0xff] }
 0x371   :  { %3454 = vmatprep.subr.bf16.mxu1 %v5211_v18  ;;  %v6602_v18 = vld [vmem:[#allocation18_spill] sm:$0xff] }
 0x374   :  { %3456 = vmatpush1.bf16.msra.mxu1 %v6592_v29 }
 0x375   :  { %3458 = vmatprep.subr.bf16.mxu1 %v6593_v11 }
 0x378   :  { %3460 = vmatpush1.bf16.msra.mxu1 %v6594_v44 }
 0x379   :  { %3462 = vmatprep.subr.bf16.mxu1 %v6595_v42 }
 0x37c   :  { %3464 = vmatpush1.bf16.msra.mxu1 %v6596_v51 }
 0x37d   :  { %3466 = vmatprep.subr.bf16.mxu1 %v6597_v9 }
 0x380   :  { %3468 = vmatpush1.bf16.msra.mxu1 %v6598_v22 }
 0x381   :  { %3470 = vmatprep.subr.bf16.mxu1 %v6599_v49 }
 0x384   :  { %3472 = vmatpush1.bf16.msra.mxu1 %v6600_v24 }
 0x385   :  { %3474 = vmatprep.subr.bf16.mxu1 %v6601_v62 }
 0x388   :  { %3476 = vmatpush1.bf16.msra.mxu1 %v6602_v18 }
 0x389   :  { %3478 = vmatprep.subr.bf16.mxu1 %v6603_v23 }
 0x38c   :  { %3480 = vmatpush1.bf16.msra.mxu1 %v6604_v32 }
 0x38d   :  { %3482 = vmatprep.subr.bf16.mxu1 %v6605_v0 }
 0x390   :  { %3484 = vmatpush1.bf16.msra.mxu1 %v6606_v15 }
 0x391   :  { %3486 = vmatprep.subr.bf16.mxu1 %v6607_v4 }
 0x394   :  { %3488 = vmatpush1.bf16.msra.mxu1 %v5330_v56 }
 0x395   :  { %3490 = vmatprep.subr.bf16.mxu1 %v5337_v5 }
 0x398   :  { %3492 = vmatpush1.bf16.msra.mxu1 %v5344_v38 }
 0x399   :  { %3494 = vmatprep.subr.bf16.mxu1 %v5351_v61 }
 0x39c   :  { %3496 = vmatpush1.bf16.msra.mxu1 %v5358_v20 }
 0x39d   :  { %3498 = vmatprep.subr.bf16.mxu1 %v5365_v1 }
 0x3a0   :  { %3500 = vmatpush1.bf16.msra.mxu1 %v5372_v40 }
 0x3a1   :  { %3502 = vmatprep.subr.bf16.mxu1 %v5379_v14 }
 0x3a4   :  { %3504 = vmatpush1.bf16.msra.mxu1 %v5386_v58 }
 0x3a5   :  { %3506 = vmatprep.subr.bf16.mxu1 %v6367_v50 }
 0x3a7   :  { %2567 = vmatmul.mubr.f32.vlgmr.msra.gmra.mrb[0].mxu1 %v5431_v6 }
 0x3a8   :  { %3508 = vmatpush1.bf16.msra.mxu1 %v6369_v34  ;;  %2702 = vmatprep.mubr.f32.mxu1 %v5433_v31 }
 0x3a9   :  { %3510 = vmatprep.subr.bf16.mxu1 %v6371_v19 }
 0x3ac   :  { %3512 = vmatpush1.bf16.msra.mxu1 %v6372_v48 }
 0x3ad   :  { %3514 = vmatprep.subr.bf16.mxu1 %v6373_v60 }
 0x3b0   :  { %3516 = vmatpush1.bf16.msra.mxu1 %v6374_v53 }
 0x3b1   :  { %3518 = vmatprep.subr.bf16.mxu1 %v6375_v25 }
 0x3b4   :  { %3520 = vmatpush1.bf16.msra.mxu1 %v6376_v27 }
 0x3b5   :  { %3522 = vmatprep.subr.bf16.mxu1 %v6377_v33 }
 0x3b8   :  { %3524 = vmatpush1.bf16.msra.mxu1 %v6378_v16 }
 0x3b9   :  { %3526 = vmatprep.subr.bf16.mxu1 %v6379_v45 }
 0x3bc   :  { %3528 = vmatpush1.bf16.msra.mxu1 %v6380_v36 }
 0x3bd   :  { %3530 = vmatprep.subr.bf16.mxu1 %v6381_v10 }
 0x3c0   :  { %3532 = vmatpush1.bf16.msra.mxu1 %v6382_v35 }
 0x3c1   :  { %3534 = vmatprep.subr.bf16.mxu1 %v6383_v26 }
 0x3c4   :  { %3536 = vmatpush1.bf16.msra.mxu1 %v6384_v39 }
 0x3c5   :  { %3538 = vmatprep.subr.bf16.mxu1 %v6385_v46 }
 0x3c8   :  { %3540 = vmatpush1.bf16.msra.mxu1 %v6386_v3 }
 0x3c9   :  { %3542 = vmatprep.subr.bf16.mxu1 %v6387_v52 }
 0x3cc   :  { %3544 = vmatpush1.bf16.msra.mxu1 %v6388_v7 }
 0x3cd   :  { %3546 = vmatprep.subr.bf16.mxu1 %v6389_v41 }
 0x3d0   :  { %3548 = vmatpush1.bf16.msra.mxu1 %v6390_v63 }
 0x3d1   :  { %3550 = vmatprep.subr.bf16.mxu1 %v6391_v55 }
 0x3d4   :  { %3552 = vmatpush1.bf16.msra.mxu1 %v6392_v59 }
 0x3d5   :  { %3554 = vmatprep.subr.bf16.mxu1 %v6393_v13 }
 0x3d8   :  { %3556 = vmatpush1.bf16.msra.mxu1 %v6394_v17 }
 0x3d9   :  { %3558 = vmatprep.subr.bf16.mxu1 %v6395_v28 }
 0x3dc   :  { %3560 = vmatpush1.bf16.msra.mxu1 %v6396_v57 }
 0x3dd   :  { %3562 = vmatprep.subr.bf16.mxu1 %v6523_v43 }
 0x3e0   :  { %3564 = vmatpush1.bf16.msra.mxu1 %v6524_v2 }
 0x3e1   :  { %3566 = vmatprep.subr.bf16.mxu1 %v6525_v37 }
 0x3e4   :  { %3568 = vmatpush1.bf16.msra.mxu1 %v6402_v54 }
 0x3e7   :  { %2704 = vmatmul.mubr.f32.vlgmr.msra.gmra.mrb[0].mxu1 %v5431_v6 }
 0x4ba   :  { %v2705_v52 = vpop.f32.mrb[0].mxu1 }
 0x4bb   :  { %v2710_v7 = vmax.f32 %v2705_v52, 0.0  ;;  %v2707_v35 = vpop.f32.mrb[1].mxu1 }
 0x4bc   :  { %v2711_v3 = vmax.f32 %v2707_v35, 0.0 }
 0x4bd   :  { %3597 = vrsqrt.f32 %v2710_v7  ;;  %vm2714_vm0 = vcmp.eq.f32.partialorder %v2710_v7, inf  ;;  %v2717_v48 = vand.u32 2147483648, %v2710_v7  ;;  %vm2716_vm1 = vcmp.eq.f32.partialorder %v2710_v7, 0.0 }
 0x4be   :  { %3599 = vrsqrt.f32 %v2711_v3  ;;  %vm2721_vm2 = vcmp.eq.f32.partialorder %v2711_v3, inf  ;;  %v2724_v60 = vand.u32 2147483648, %v2711_v3  ;;  %vm2723_vm3 = vcmp.eq.f32.partialorder %v2711_v3, 0.0 }
 0x4c7   :  { %v3598_v45 = vpop.eup %3597 }
 0x4c8   :  { %v3600_v50 = vpop.eup %3599  ;;  %v2713_v16 = vmul.f32 %v3598_v45, %v2710_v7 }
 0x4c9   :  { %v2720_v33 = vmul.f32 %v3600_v50, %v2711_v3 }
 0x4ca   :  { %v2715_v27 = vsel %vm2714_vm0, %v2710_v7, %v2713_v16 }
 0x4cb   :  { %v2718_v46 = vsel %vm2716_vm1, %v2717_v48, %v2715_v27  ;;  %v2722_v25 = vsel %vm2721_vm2, %v2711_v3, %v2720_v33 }
 0x4cc   :  { %v2725_v19 = vsel %vm2723_vm3, %v2724_v60, %v2722_v25  ;;  %v2726_v57 = vadd.f32 1e-06, %v2718_v46 }
 0x4cd   :  { %v2727_v59 = vadd.f32 1e-06, %v2725_v19  ;;  %v2745_v28 = vcombine.low %v2718_v46, %v2725_v19 }
 0x4ce   :  { %3601 = vrcp.f32 %v2726_v57 }
 0x4cf   :  { %3603 = vrcp.f32 %v2727_v59  ;;  %2799 = vst.sshfl [vmem:[#allocation8] sm:$0x33 pattern:$0x76325410] %v2745_v28 }
 0x4d0   :  { %3662 = shalt.err (!%p3659_p6)
}
 0x4d1   :  { %s3663_s20 = scalar_lea.hbm %s5661_s3, 64 }
 0x4d2   :  { %p3664_p7 = scmp.ne.s32.totalorder %s5661_s3, %s3663_s20  ;;  %p3667_p8 = scmp.lt.u32.totalorder %s3663_s20, %s5661_s3 }
 0x4d4   :  { %p3669_p9 = pnand %p3667_p8, %p3664_p7 }
 0x4d6   :  { %3672 = shalt.err (!%p3669_p9)
}
 0x4d7   :  { %2775 = dma.vmem_to_hbm [thread:$0]  %s2773_s14, 64, %s5661_s3, [#allocation9]  }
 0x4d8   :  { %s3673_s27 = scalar_lea.vmem %s2783_s16, 64  ;;  %p3678_p11 = scmp.lt.s32.totalorder %s2783_s16, %s2783_s16 }
 0x4d9   :  { %p3674_p10 = scmp.ne.s32.totalorder %s2783_s16, %s3673_s27  ;;  %p3679_p12 = scmp.lt.s32.totalorder %s3673_s27, %s3673_s27 }
 0x4db   :  { %p3680_p13 = por %p3679_p12, %p3678_p11 }
 0x4dd   :  { %p3681_p0 = pnand %p3680_p13, %p3674_p10 }
 0x4df   :  { %3684 = shalt.err (!%p3681_p0)
}
 0x4e0   :  { %s3685_s30 = scalar_lea.hbm %s5662_s4, 64 }
 0x4e1   :  { %p3686_p1 = scmp.ne.s32.totalorder %s5662_s4, %s3685_s30  ;;  %p3689_p2 = scmp.lt.u32.totalorder %s3685_s30, %s5662_s4 }
 0x4e3   :  { %p3691_p3 = pnand %p3689_p2, %p3686_p1 }
 0x4e5   :  { %3694 = shalt.err (!%p3691_p3)
}
 0x4e6   :  { %2785 = dma.vmem_to_hbm [thread:$0]  %s2783_s16, 64, %s5662_s4, [#allocation9]   ;;  %v3602_v17 = vpop.eup %3601  ;;  %v6608_v63 = vld [vmem:[#allocation35_spill] sm:$0xff]  ;;  %v6609_v39 = vld [vmem:[#allocation25_spill] sm:$0xff] }
 0x4e7   :  { %v3604_v13 = vpop.eup %3603  ;;  %s3732_s10 = smov [#allocation7]  }
 0x4e8   :  { %v2732_v55 = vcombine.low %v3602_v17, %v3604_v13  ;;  %s2762_s0 = sshll.u32 %s3732_s10, 4  ;;  %s2763_s0 = int_to_ptr.vmem [resolvable:$true] %s2762_s0 }
 0x4e9   :  { %s3695_s11 = scalar_lea.vmem %s2763_s0, 64  ;;  %p3700_p5 = scmp.lt.s32.totalorder %s2763_s0, %s2763_s0 }
 0x4ea   :  { %v2739_v41 = vrot.slane %v2732_v55, %v6608_v63  ;;  %p3696_p4 = scmp.ne.s32.totalorder %s2763_s0, %s3695_s11  ;;  %p3701_p6 = scmp.lt.s32.totalorder %s3695_s11, %s3695_s11 }
 0x4ec   :  { %v2741_v26 = vmul.f32 %v2739_v41, %v6609_v39  ;;  %p3702_p7 = por %p3701_p6, %p3700_p5 }
 0x4ee   :  { %2742 = vst [vmem:[#allocation7] sm:$0xf] %v2741_v26  ;;  %p3703_p8 = pnand %p3702_p7, %p3696_p4 }
 0x4f0   :  { %3706 = shalt.err (!%p3703_p8)
}
 0x4f1   :  { %s3707_s13 = scalar_lea.hbm %s5660_s2, 64 }
 0x4f2   :  { %p3708_p9 = scmp.ne.s32.totalorder %s5660_s2, %s3707_s13  ;;  %p3711_p10 = scmp.lt.u32.totalorder %s3707_s13, %s5660_s2 }
 0x4f4   :  { %p3713_p11 = pnand %p3711_p10, %p3708_p9 }
 0x4f6   :  { %3716 = shalt.err (!%p3713_p11)
}
 0x4f7   :  { %2765 = dma.vmem_to_hbm [thread:$0]  %s2763_s0, 64, %s5660_s2, [#allocation4]  }
 0x4f8   :  { %3721 = dma.done.wait [#allocation4], 64  }
 0x4f9   :  { %3722 = vsyncadd [#allocation4], 4294967232 }
 0x4fa   :  { %3723 = dma.done.wait [#allocation9], 128  }
 0x4fb   :  { %3724 = vsyncadd [#allocation9], 4294967168 }
 0x4fc   :  { %2795 = vsyncpa [#allocation3], 1 }
 0x4fd   :  { %2796 = vsyncpa [#allocation6], 1 }
 0x4fe   :  { %2797 = vsyncpa [#allocation4], 1 }
 0x4ff   :  { %2798 = vsyncpa [#allocation9], 1 }

</bundles_post_ra>
